<compile_context>
chip_gen: v6e
topology: v6e:2x2x1
jax: 0.10.0
libtpu: 0.0.40
codegen_flags: <defaults>
</compile_context>

<pallas_src>
import jax
import jax.numpy as jnp
from jax import lax
from jax.experimental import pallas as pl
from jax.experimental.pallas import tpu as pltpu

# Config (synthetic, matches the module's __init__ shape relations)
INPUT_SIZE = 8
HIDDEN_SIZE = 32
NUM_LAYERS = 2
BATCH = 2
SEQ = 8
BP = 8  # batch rows padded to one full sublane tile (free; fills 8/8 sublanes)


# ----------------------------------------------------------------------------
# Single fused kernel: bidirectional 2-layer LSTM + relu(fc1) -> relu(fc2) -> fc3
# ----------------------------------------------------------------------------
def _fused_lstm_mlp_kernel(
    xcat_ref,                                   # (T, BP, 2D): [x[t] | x[T-1-t]]
    w0_cat, whh0_blk, b0_cat,                   # layer 0, both directions fused
    w1f_top, w1f_bot, w1f_hh, b1f,              # layer 1 fwd (input weights split)
    w1b_top, w1b_bot, b1b,                      # layer 1 bwd (single step; no W_hh)
    fc1_top, fc1_bot, fc1_b, fc2_w, fc2_b, fc3_w, fc3_b,   # MLP head
    out_ref,                                    # (B, 5)
    seq0f_ref, seq0b_ref,                       # scratch: (T, BP, H) each
):
    T, BPk, D2 = xcat_ref.shape
    H = w1f_top.shape[0]
    H2 = 2 * H                                  # 64
    f32 = jnp.float32

    # Fused gate column layout (gate-major pairs), total 8H = 256 lanes:
    #   [ i_f i_b | f_f f_b | g_f g_b | o_f o_b ]   each sub-block H wide.

    # ---- Layer 0: one hoisted input projection for BOTH directions ----------
    xcat2d = xcat_ref[...].reshape(T * BPk, D2)                 # layout-identical reshape
    gx0 = (jnp.dot(xcat2d, w0_cat[...], preferred_element_type=f32)
           + b0_cat[...]).reshape(T, BPk, 8 * H)

    whh0 = whh0_blk[...]                                        # (2H, 8H) block-diag
    h_both = jnp.zeros((BPk, H2), f32)                          # [hf | hb]
    c_both = jnp.zeros((BPk, H2), f32)                          # [cf | cb]

    # Fully unrolled time loop (T static).  fwd processes t, bwd processes T-1-t;
    # both share ONE matmul, ONE sigmoid, ONE tanh(g), ONE tanh(c) per step.
    for t in range(T):
        tb = T - 1 - t
        gates = gx0[t] + jnp.dot(h_both, whh0, preferred_element_type=f32)  # (BP, 8H)
        s = jax.nn.sigmoid(gates)                               # i/f/o pairs (g wasted)
        g = jnp.tanh(gates[:, 2 * H2:3 * H2])                   # g pair only
        c_both = s[:, H2:2 * H2] * c_both + s[:, 0:H2] * g
        h_both = s[:, 3 * H2:4 * H2] * jnp.tanh(c_both)
        # Stores are off the recurrent critical path; split buffers keep the
        # destinations at lane offset 0 (no H:2H masked-store lane shuffle).
        seq0f_ref[t] = h_both[:, 0:H]
        seq0b_ref[tb] = h_both[:, H:H2]

    # ---- Layer 1 -------------------------------------------------------------
    # Forward: hoisted input projection (split row-wise over the fwd/bwd halves
    # of the layer-0 output), then the full serial recurrence; only the final
    # hidden state is consumed by the head.
    seqf2d = seq0f_ref[...].reshape(T * BPk, H)
    seqb2d = seq0b_ref[...].reshape(T * BPk, H)
    gx1 = (jnp.dot(seqf2d, w1f_top[...], preferred_element_type=f32)
           + jnp.dot(seqb2d, w1f_bot[...], preferred_element_type=f32)
           + b1f[...]).reshape(T, BPk, 4 * H)

    whh1 = w1f_hh[...]
    h1 = jnp.zeros((BPk, H), f32)
    c1 = jnp.zeros((BPk, H), f32)
    for t in range(T):
        gates = gx1[t] + jnp.dot(h1, whh1, preferred_element_type=f32)      # (BP, 4H)
        s = jax.nn.sigmoid(gates)
        g = jnp.tanh(gates[:, 2 * H:3 * H])
        c1 = s[:, H:2 * H] * c1 + s[:, 0:H] * g
        h1 = s[:, 3 * H:4 * H] * jnp.tanh(c1)

    # Backward: only its FIRST step (original t = T-1) appears in lstm_out[:, -1];
    # it starts from zero state, so the f-gate term and W_hh contribute nothing.
    gb = (jnp.dot(seq0f_ref[T - 1], w1b_top[...], preferred_element_type=f32)
          + jnp.dot(seq0b_ref[T - 1], w1b_bot[...], preferred_element_type=f32)
          + b1b[...])
    sb = jax.nn.sigmoid(gb)
    cb = sb[:, 0:H] * jnp.tanh(gb[:, 2 * H:3 * H])
    h1b = sb[:, 3 * H:4 * H] * jnp.tanh(cb)

    # ---- MLP head (Dropout(0.3) is identity at inference) --------------------
    # fc1 weights are split row-wise so no concatenate([h1, h1b]) is needed.
    z1 = jnp.maximum(
        jnp.dot(h1, fc1_top[...], preferred_element_type=f32)
        + jnp.dot(h1b, fc1_bot[...], preferred_element_type=f32)
        + fc1_b[...], 0.0)
    z2 = jnp.maximum(
        jnp.dot(z1, fc2_w[...], preferred_element_type=f32) + fc2_b[...], 0.0)
    res = jnp.dot(z2, fc3_w[...], preferred_element_type=f32) + fc3_b[...]
    out_ref[...] = res[0:out_ref.shape[0], :]                   # drop pad rows


# ----------------------------------------------------------------------------
# One-time weight re-packing for the fused kernel (pure jnp, outside the kernel)
# ----------------------------------------------------------------------------
def _prepare_fused_params(params):
    H = HIDDEN_SIZE
    D = INPUT_SIZE
    f32 = jnp.float32

    w0f, w0b = params["l0_fwd"]["w_ih_t"], params["l0_bwd"]["w_ih_t"]   # (D, 4H)
    whf, whb = params["l0_fwd"]["w_hh_t"], params["l0_bwd"]["w_hh_t"]   # (H, 4H)
    b0f, b0b = params["l0_fwd"]["bias"], params["l0_bwd"]["bias"]       # (1, 4H)

    zd = jnp.zeros((D, H), f32)
    zh = jnp.zeros((H, H), f32)
    ih_cols, hh_cols, b_cols = [], [], []
    for k in range(4):  # PyTorch gate order i, f, g, o
        cf, cb = slice(k * H, (k + 1) * H), slice(k * H, (k + 1) * H)
        # gate-major pair layout: [gate_k fwd | gate_k bwd]
        ih_cols += [jnp.concatenate([w0f[:, cf], zd], axis=0),
                    jnp.concatenate([zd, w0b[:, cb]], axis=0)]
        hh_cols += [jnp.concatenate([whf[:, cf], zh], axis=0),
                    jnp.concatenate([zh, whb[:, cb]], axis=0)]
        b_cols += [b0f[:, cf], b0b[:, cb]]
    w0_cat = jnp.concatenate(ih_cols, axis=1)     # (2D, 8H)
    whh0_blk = jnp.concatenate(hh_cols, axis=1)   # (2H, 8H) block-diagonal
    b0_cat = jnp.concatenate(b_cols, axis=1)      # (1, 8H)

    w1f = params["l1_fwd"]["w_ih_t"]              # (2H, 4H)
    w1b = params["l1_bwd"]["w_ih_t"]
    fc1 = params["fc1_w"]                         # (2H, 2H)

    return dict(
        w0_cat=w0_cat, whh0_blk=whh0_blk, b0_cat=b0_cat,
        w1f_top=w1f[:H], w1f_bot=w1f[H:],
        w1f_hh=params["l1_fwd"]["w_hh_t"], b1f=params["l1_fwd"]["bias"],
        w1b_top=w1b[:H], w1b_bot=w1b[H:], b1b=params["l1_bwd"]["bias"],
        fc1_top=fc1[:H], fc1_bot=fc1[H:], fc1_b=params["fc1_b"],
        fc2_w=params["fc2_w"], fc2_b=params["fc2_b"],
        fc3_w=params["fc3_w"], fc3_b=params["fc3_b"],
    )


def lstm_model_forward(x, params):
    """x: (B, T, INPUT_SIZE), batch_first like the PyTorch module."""
    B, T, D = x.shape
    H = HIDDEN_SIZE
    fp = _prepare_fused_params(params)

    # Time-major, batch padded to 8 sublane rows (zero pad -> finite LSTM states
    # in pad rows; they never reach the output).  xcat packs x[t] with the
    # time-reversed x so the fused layer-0 projection covers both directions.
    x_tm = jnp.pad(jnp.transpose(x.astype(jnp.float32), (1, 0, 2)),
                   ((0, 0), (0, BP - B), (0, 0)))               # (T, BP, D)
    xcat = jnp.concatenate([x_tm, x_tm[::-1]], axis=-1)         # (T, BP, 2D)

    vmem = pl.BlockSpec(memory_space=pltpu.MemorySpace.VMEM)
    return pl.pallas_call(
        _fused_lstm_mlp_kernel,
        out_shape=jax.ShapeDtypeStruct((B, 5), jnp.float32),
        in_specs=[vmem] * 18,
        out_specs=vmem,
        scratch_shapes=[pltpu.VMEM((T, BP, H), jnp.float32),
                        pltpu.VMEM((T, BP, H), jnp.float32)],
    )(
        xcat,
        fp["w0_cat"], fp["whh0_blk"], fp["b0_cat"],
        fp["w1f_top"], fp["w1f_bot"], fp["w1f_hh"], fp["b1f"],
        fp["w1b_top"], fp["w1b_bot"], fp["b1b"],
        fp["fc1_top"], fp["fc1_bot"], fp["fc1_b"],
        fp["fc2_w"], fp["fc2_b"], fp["fc3_w"], fp["fc3_b"],
    )


# ----------------------------------------------------------------------------
# Parameter init (deterministic, PyTorch-style uniform(-1/sqrt(fan), +1/sqrt(fan)))
# Raw (per-direction) weights, stored pre-transposed: W_ih^T, W_hh^T, Linear W^T.
# ----------------------------------------------------------------------------
def init_params(key):
    params = {}
    keys = iter(jax.random.split(key, 64))

    def unif(k, shape, bound):
        return jax.random.uniform(k, shape, jnp.float32, -bound, bound)

    lstm_bound = 1.0 / float(jnp.sqrt(jnp.float32(HIDDEN_SIZE)))
    for layer in range(NUM_LAYERS):
        in_size = INPUT_SIZE if layer == 0 else 2 * HIDDEN_SIZE
        for name in ("fwd", "bwd"):
            w_ih = unif(next(keys), (4 * HIDDEN_SIZE, in_size), lstm_bound)
            w_hh = unif(next(keys), (4 * HIDDEN_SIZE, HIDDEN_SIZE), lstm_bound)
            b_ih = unif(next(keys), (4 * HIDDEN_SIZE,), lstm_bound)
            b_hh = unif(next(keys), (4 * HIDDEN_SIZE,), lstm_bound)
            params[f"l{layer}_{name}"] = {
                "w_ih_t": w_ih.T,
                "w_hh_t": w_hh.T,
                "bias": (b_ih + b_hh).reshape(1, 4 * HIDDEN_SIZE),
            }

    def linear(k1, k2, fan_in, fan_out):
        bound = 1.0 / float(jnp.sqrt(jnp.float32(fan_in)))
        w = unif(k1, (fan_out, fan_in), bound)
        b = unif(k2, (fan_out,), bound)
        return w.T, b.reshape(1, fan_out)

    params["fc1_w"], params["fc1_b"] = linear(next(keys), next(keys),
                                              2 * HIDDEN_SIZE, 2 * HIDDEN_SIZE)
    params["fc2_w"], params["fc2_b"] = linear(next(keys), next(keys),
                                              2 * HIDDEN_SIZE, 128)
    params["fc3_w"], params["fc3_b"] = linear(next(keys), next(keys), 128, 5)
    return params


# ----------------------------------------------------------------------------
# Pure-JAX reference (full bidirectional scan, uses l1_bwd W_hh too) — validates
# the fused kernel including the block-diag fusion and "first bwd step" shortcut.
# ----------------------------------------------------------------------------
def _reference_forward(x, params):
    B, T, _ = x.shape
    H = HIDDEN_SIZE

    def run_dir(inp, p):  # inp: (T, B, Din) time-major
        def step(carry, xt):
            h, c = carry
            gates = xt @ p["w_ih_t"] + h @ p["w_hh_t"] + p["bias"]
            i = jax.nn.sigmoid(gates[:, 0 * H:1 * H])
            f = jax.nn.sigmoid(gates[:, 1 * H:2 * H])
            g = jnp.tanh(gates[:, 2 * H:3 * H])
            o = jax.nn.sigmoid(gates[:, 3 * H:4 * H])
            c = f * c + i * g
            h = o * jnp.tanh(c)
            return (h, c), h

        init = (jnp.zeros((B, H), jnp.float32), jnp.zeros((B, H), jnp.float32))
        _, hs = lax.scan(step, init, inp)
        return hs

    inp = jnp.transpose(x, (1, 0, 2)).astype(jnp.float32)
    for layer in range(NUM_LAYERS):
        hf = run_dir(inp, params[f"l{layer}_fwd"])
        hb = run_dir(inp[::-1], params[f"l{layer}_bwd"])[::-1]
        inp = jnp.concatenate([hf, hb], axis=-1)
    last = inp[-1]
    z1 = jnp.maximum(last @ params["fc1_w"] + params["fc1_b"], 0.0)
    z2 = jnp.maximum(z1 @ params["fc2_w"] + params["fc2_b"], 0.0)
    return z2 @ params["fc3_w"] + params["fc3_b"]


if __name__ == "__main__":
    key = jax.random.PRNGKey(0)
    pkey, xkey = jax.random.split(key)
    params = init_params(pkey)
    x = jax.random.normal(xkey, (BATCH, SEQ, INPUT_SIZE), dtype=jnp.float32)

    out = lstm_model_forward(x, params)
    out = jax.block_until_ready(out)
    assert out.shape == (BATCH, 5), out.shape

    ref = _reference_forward(x, params)
    err = float(jnp.max(jnp.abs(out - ref)))
    assert err < 1e-3, f"kernel/reference mismatch: max abs err = {err}"
    print("KERNEL_OK")
</pallas_src>

<mosaic_0001>
module attributes {stable_mosaic.version = 11 : i64} {
  func.func @_fused_lstm_mlp_kernel(%arg0: memref<8x8x16xf32, #tpu.memory_space<vmem>>, %arg1: memref<16x256xf32, #tpu.memory_space<vmem>>, %arg2: memref<64x256xf32, #tpu.memory_space<vmem>>, %arg3: memref<1x256xf32, #tpu.memory_space<vmem>>, %arg4: memref<32x128xf32, #tpu.memory_space<vmem>>, %arg5: memref<32x128xf32, #tpu.memory_space<vmem>>, %arg6: memref<32x128xf32, #tpu.memory_space<vmem>>, %arg7: memref<1x128xf32, #tpu.memory_space<vmem>>, %arg8: memref<32x128xf32, #tpu.memory_space<vmem>>, %arg9: memref<32x128xf32, #tpu.memory_space<vmem>>, %arg10: memref<1x128xf32, #tpu.memory_space<vmem>>, %arg11: memref<32x64xf32, #tpu.memory_space<vmem>>, %arg12: memref<32x64xf32, #tpu.memory_space<vmem>>, %arg13: memref<1x64xf32, #tpu.memory_space<vmem>>, %arg14: memref<64x128xf32, #tpu.memory_space<vmem>>, %arg15: memref<1x128xf32, #tpu.memory_space<vmem>>, %arg16: memref<128x5xf32, #tpu.memory_space<vmem>>, %arg17: memref<1x5xf32, #tpu.memory_space<vmem>>, %arg18: memref<2x5xf32, #tpu.memory_space<vmem>>, %arg19: memref<8x8x32xf32, #tpu.memory_space<vmem>>, %arg20: memref<8x8x32xf32, #tpu.memory_space<vmem>>) attributes {dimension_semantics = [], scalar_prefetch = 0 : i64, scratch_operands = 2 : i64, tpu.core_type = #tpu.core_type<tc>} {
    %c0 = arith.constant 0 : index
    %c0_0 = arith.constant 0 : index
    %c0_1 = arith.constant 0 : index
    %0 = vector.load %arg0[%c0, %c0_0, %c0_1] : memref<8x8x16xf32, #tpu.memory_space<vmem>>, vector<8x8x16xf32>
    %1 = vector.shape_cast %0 : vector<8x8x16xf32> to vector<64x16xf32>
    %c0_2 = arith.constant 0 : index
    %c0_3 = arith.constant 0 : index
    %2 = vector.load %arg1[%c0_2, %c0_3] : memref<16x256xf32, #tpu.memory_space<vmem>>, vector<16x256xf32>
    %cst = arith.constant dense<0.000000e+00> : vector<64x256xf32>
    %3 = tpu.matmul %1, %2, %cst {dimension_numbers = #tpu.dot_dimension_numbers<[1], [0], [0], [1], [0, 0, 1, 1], [], []>} : vector<64x16xf32>, vector<16x256xf32>, vector<64x256xf32> -> vector<64x256xf32>
    %c0_4 = arith.constant 0 : index
    %c0_5 = arith.constant 0 : index
    %4 = vector.load %arg3[%c0_4, %c0_5] : memref<1x256xf32, #tpu.memory_space<vmem>>, vector<1x256xf32>
    %5 = vector.broadcast %4 : vector<1x256xf32> to vector<64x256xf32>
    %6 = arith.addf %3, %5 : vector<64x256xf32>
    %7 = vector.shape_cast %6 : vector<64x256xf32> to vector<8x8x256xf32>
    %c0_6 = arith.constant 0 : index
    %c0_7 = arith.constant 0 : index
    %8 = vector.load %arg2[%c0_6, %c0_7] : memref<64x256xf32, #tpu.memory_space<vmem>>, vector<64x256xf32>
    %cst_8 = arith.constant 0.000000e+00 : f32
    %9 = vector.broadcast %cst_8 : f32 to vector<8x64xf32>
    %cst_9 = arith.constant 0.000000e+00 : f32
    %10 = vector.broadcast %cst_9 : f32 to vector<8x64xf32>
    %11 = vector.extract_strided_slice %7 {offsets = [0, 0, 0], sizes = [1, 8, 256], strides = [1, 1, 1]} : vector<8x8x256xf32> to vector<1x8x256xf32>
    %12 = vector.shape_cast %11 : vector<1x8x256xf32> to vector<8x256xf32>
    %cst_10 = arith.constant dense<0.000000e+00> : vector<8x256xf32>
    %13 = tpu.matmul %9, %8, %cst_10 {dimension_numbers = #tpu.dot_dimension_numbers<[1], [0], [0], [1], [0, 0, 1, 1], [], []>} : vector<8x64xf32>, vector<64x256xf32>, vector<8x256xf32> -> vector<8x256xf32>
    %14 = arith.addf %12, %13 : vector<8x256xf32>
    %15 = arith.negf %14 : vector<8x256xf32>
    %16 = math.exp %15 : vector<8x256xf32>
    %cst_11 = arith.constant 1.000000e+00 : f32
    %17 = vector.broadcast %cst_11 : f32 to vector<8x256xf32>
    %18 = arith.addf %17, %16 : vector<8x256xf32>
    %19 = arith.divf %17, %18 : vector<8x256xf32>
    %20 = vector.extract_strided_slice %14 {offsets = [0, 128], sizes = [8, 64], strides = [1, 1]} : vector<8x256xf32> to vector<8x64xf32>
    %21 = math.tanh %20 : vector<8x64xf32>
    %22 = vector.extract_strided_slice %19 {offsets = [0, 64], sizes = [8, 64], strides = [1, 1]} : vector<8x256xf32> to vector<8x64xf32>
    %23 = arith.mulf %22, %10 : vector<8x64xf32>
    %24 = vector.extract_strided_slice %19 {offsets = [0, 0], sizes = [8, 64], strides = [1, 1]} : vector<8x256xf32> to vector<8x64xf32>
    %25 = arith.mulf %24, %21 : vector<8x64xf32>
    %26 = arith.addf %23, %25 : vector<8x64xf32>
    %27 = vector.extract_strided_slice %19 {offsets = [0, 192], sizes = [8, 64], strides = [1, 1]} : vector<8x256xf32> to vector<8x64xf32>
    %28 = math.tanh %26 : vector<8x64xf32>
    %29 = arith.mulf %27, %28 : vector<8x64xf32>
    %30 = vector.extract_strided_slice %29 {offsets = [0, 0], sizes = [8, 32], strides = [1, 1]} : vector<8x64xf32> to vector<8x32xf32>
    %c0_12 = arith.constant 0 : index
    %c0_13 = arith.constant 0 : index
    %c0_14 = arith.constant 0 : index
    %31 = vector.load %arg19[%c0_12, %c0_13, %c0_14] : memref<8x8x32xf32, #tpu.memory_space<vmem>>, vector<1x8x32xf32>
    %32 = vector.shape_cast %31 : vector<1x8x32xf32> to vector<8x32xf32>
    %33 = vector.shape_cast %30 : vector<8x32xf32> to vector<1x8x32xf32>
    tpu.vector_store %arg19[%c0_12, %c0_13, %c0_14], %33 {strides = array<i32>} : memref<8x8x32xf32, #tpu.memory_space<vmem>>, vector<1x8x32xf32>,
    %34 = vector.extract_strided_slice %29 {offsets = [0, 32], sizes = [8, 32], strides = [1, 1]} : vector<8x64xf32> to vector<8x32xf32>
    %c7 = arith.constant 7 : index
    %c0_15 = arith.constant 0 : index
    %c0_16 = arith.constant 0 : index
    %35 = vector.load %arg20[%c7, %c0_15, %c0_16] : memref<8x8x32xf32, #tpu.memory_space<vmem>>, vector<1x8x32xf32>
    %36 = vector.shape_cast %35 : vector<1x8x32xf32> to vector<8x32xf32>
    %37 = vector.shape_cast %34 : vector<8x32xf32> to vector<1x8x32xf32>
    tpu.vector_store %arg20[%c7, %c0_15, %c0_16], %37 {strides = array<i32>} : memref<8x8x32xf32, #tpu.memory_space<vmem>>, vector<1x8x32xf32>,
    %38 = vector.extract_strided_slice %7 {offsets = [1, 0, 0], sizes = [1, 8, 256], strides = [1, 1, 1]} : vector<8x8x256xf32> to vector<1x8x256xf32>
    %39 = vector.shape_cast %38 : vector<1x8x256xf32> to vector<8x256xf32>
    %cst_17 = arith.constant dense<0.000000e+00> : vector<8x256xf32>
    %40 = tpu.matmul %29, %8, %cst_17 {dimension_numbers = #tpu.dot_dimension_numbers<[1], [0], [0], [1], [0, 0, 1, 1], [], []>} : vector<8x64xf32>, vector<64x256xf32>, vector<8x256xf32> -> vector<8x256xf32>
    %41 = arith.addf %39, %40 : vector<8x256xf32>
    %42 = arith.negf %41 : vector<8x256xf32>
    %43 = math.exp %42 : vector<8x256xf32>
    %cst_18 = arith.constant 1.000000e+00 : f32
    %44 = vector.broadcast %cst_18 : f32 to vector<8x256xf32>
    %45 = arith.addf %44, %43 : vector<8x256xf32>
    %46 = arith.divf %44, %45 : vector<8x256xf32>
    %47 = vector.extract_strided_slice %41 {offsets = [0, 128], sizes = [8, 64], strides = [1, 1]} : vector<8x256xf32> to vector<8x64xf32>
    %48 = math.tanh %47 : vector<8x64xf32>
    %49 = vector.extract_strided_slice %46 {offsets = [0, 64], sizes = [8, 64], strides = [1, 1]} : vector<8x256xf32> to vector<8x64xf32>
    %50 = arith.mulf %49, %26 : vector<8x64xf32>
    %51 = vector.extract_strided_slice %46 {offsets = [0, 0], sizes = [8, 64], strides = [1, 1]} : vector<8x256xf32> to vector<8x64xf32>
    %52 = arith.mulf %51, %48 : vector<8x64xf32>
    %53 = arith.addf %50, %52 : vector<8x64xf32>
    %54 = vector.extract_strided_slice %46 {offsets = [0, 192], sizes = [8, 64], strides = [1, 1]} : vector<8x256xf32> to vector<8x64xf32>
    %55 = math.tanh %53 : vector<8x64xf32>
    %56 = arith.mulf %54, %55 : vector<8x64xf32>
    %57 = vector.extract_strided_slice %56 {offsets = [0, 0], sizes = [8, 32], strides = [1, 1]} : vector<8x64xf32> to vector<8x32xf32>
    %c1 = arith.constant 1 : index
    %c0_19 = arith.constant 0 : index
    %c0_20 = arith.constant 0 : index
    %58 = vector.load %arg19[%c1, %c0_19, %c0_20] : memref<8x8x32xf32, #tpu.memory_space<vmem>>, vector<1x8x32xf32>
    %59 = vector.shape_cast %58 : vector<1x8x32xf32> to vector<8x32xf32>
    %60 = vector.shape_cast %57 : vector<8x32xf32> to vector<1x8x32xf32>
    tpu.vector_store %arg19[%c1, %c0_19, %c0_20], %60 {strides = array<i32>} : memref<8x8x32xf32, #tpu.memory_space<vmem>>, vector<1x8x32xf32>,
    %61 = vector.extract_strided_slice %56 {offsets = [0, 32], sizes = [8, 32], strides = [1, 1]} : vector<8x64xf32> to vector<8x32xf32>
    %c6 = arith.constant 6 : index
    %c0_21 = arith.constant 0 : index
    %c0_22 = arith.constant 0 : index
    %62 = vector.load %arg20[%c6, %c0_21, %c0_22] : memref<8x8x32xf32, #tpu.memory_space<vmem>>, vector<1x8x32xf32>
    %63 = vector.shape_cast %62 : vector<1x8x32xf32> to vector<8x32xf32>
    %64 = vector.shape_cast %61 : vector<8x32xf32> to vector<1x8x32xf32>
    tpu.vector_store %arg20[%c6, %c0_21, %c0_22], %64 {strides = array<i32>} : memref<8x8x32xf32, #tpu.memory_space<vmem>>, vector<1x8x32xf32>,
    %65 = vector.extract_strided_slice %7 {offsets = [2, 0, 0], sizes = [1, 8, 256], strides = [1, 1, 1]} : vector<8x8x256xf32> to vector<1x8x256xf32>
    %66 = vector.shape_cast %65 : vector<1x8x256xf32> to vector<8x256xf32>
    %cst_23 = arith.constant dense<0.000000e+00> : vector<8x256xf32>
    %67 = tpu.matmul %56, %8, %cst_23 {dimension_numbers = #tpu.dot_dimension_numbers<[1], [0], [0], [1], [0, 0, 1, 1], [], []>} : vector<8x64xf32>, vector<64x256xf32>, vector<8x256xf32> -> vector<8x256xf32>
    %68 = arith.addf %66, %67 : vector<8x256xf32>
    %69 = arith.negf %68 : vector<8x256xf32>
    %70 = math.exp %69 : vector<8x256xf32>
    %cst_24 = arith.constant 1.000000e+00 : f32
    %71 = vector.broadcast %cst_24 : f32 to vector<8x256xf32>
    %72 = arith.addf %71, %70 : vector<8x256xf32>
    %73 = arith.divf %71, %72 : vector<8x256xf32>
    %74 = vector.extract_strided_slice %68 {offsets = [0, 128], sizes = [8, 64], strides = [1, 1]} : vector<8x256xf32> to vector<8x64xf32>
    %75 = math.tanh %74 : vector<8x64xf32>
    %76 = vector.extract_strided_slice %73 {offsets = [0, 64], sizes = [8, 64], strides = [1, 1]} : vector<8x256xf32> to vector<8x64xf32>
    %77 = arith.mulf %76, %53 : vector<8x64xf32>
    %78 = vector.extract_strided_slice %73 {offsets = [0, 0], sizes = [8, 64], strides = [1, 1]} : vector<8x256xf32> to vector<8x64xf32>
    %79 = arith.mulf %78, %75 : vector<8x64xf32>
    %80 = arith.addf %77, %79 : vector<8x64xf32>
    %81 = vector.extract_strided_slice %73 {offsets = [0, 192], sizes = [8, 64], strides = [1, 1]} : vector<8x256xf32> to vector<8x64xf32>
    %82 = math.tanh %80 : vector<8x64xf32>
    %83 = arith.mulf %81, %82 : vector<8x64xf32>
    %84 = vector.extract_strided_slice %83 {offsets = [0, 0], sizes = [8, 32], strides = [1, 1]} : vector<8x64xf32> to vector<8x32xf32>
    %c2 = arith.constant 2 : index
    %c0_25 = arith.constant 0 : index
    %c0_26 = arith.constant 0 : index
    %85 = vector.load %arg19[%c2, %c0_25, %c0_26] : memref<8x8x32xf32, #tpu.memory_space<vmem>>, vector<1x8x32xf32>
    %86 = vector.shape_cast %85 : vector<1x8x32xf32> to vector<8x32xf32>
    %87 = vector.shape_cast %84 : vector<8x32xf32> to vector<1x8x32xf32>
    tpu.vector_store %arg19[%c2, %c0_25, %c0_26], %87 {strides = array<i32>} : memref<8x8x32xf32, #tpu.memory_space<vmem>>, vector<1x8x32xf32>,
    %88 = vector.extract_strided_slice %83 {offsets = [0, 32], sizes = [8, 32], strides = [1, 1]} : vector<8x64xf32> to vector<8x32xf32>
    %c5 = arith.constant 5 : index
    %c0_27 = arith.constant 0 : index
    %c0_28 = arith.constant 0 : index
    %89 = vector.load %arg20[%c5, %c0_27, %c0_28] : memref<8x8x32xf32, #tpu.memory_space<vmem>>, vector<1x8x32xf32>
    %90 = vector.shape_cast %89 : vector<1x8x32xf32> to vector<8x32xf32>
    %91 = vector.shape_cast %88 : vector<8x32xf32> to vector<1x8x32xf32>
    tpu.vector_store %arg20[%c5, %c0_27, %c0_28], %91 {strides = array<i32>} : memref<8x8x32xf32, #tpu.memory_space<vmem>>, vector<1x8x32xf32>,
    %92 = vector.extract_strided_slice %7 {offsets = [3, 0, 0], sizes = [1, 8, 256], strides = [1, 1, 1]} : vector<8x8x256xf32> to vector<1x8x256xf32>
    %93 = vector.shape_cast %92 : vector<1x8x256xf32> to vector<8x256xf32>
    %cst_29 = arith.constant dense<0.000000e+00> : vector<8x256xf32>
    %94 = tpu.matmul %83, %8, %cst_29 {dimension_numbers = #tpu.dot_dimension_numbers<[1], [0], [0], [1], [0, 0, 1, 1], [], []>} : vector<8x64xf32>, vector<64x256xf32>, vector<8x256xf32> -> vector<8x256xf32>
    %95 = arith.addf %93, %94 : vector<8x256xf32>
    %96 = arith.negf %95 : vector<8x256xf32>
    %97 = math.exp %96 : vector<8x256xf32>
    %cst_30 = arith.constant 1.000000e+00 : f32
    %98 = vector.broadcast %cst_30 : f32 to vector<8x256xf32>
    %99 = arith.addf %98, %97 : vector<8x256xf32>
    %100 = arith.divf %98, %99 : vector<8x256xf32>
    %101 = vector.extract_strided_slice %95 {offsets = [0, 128], sizes = [8, 64], strides = [1, 1]} : vector<8x256xf32> to vector<8x64xf32>
    %102 = math.tanh %101 : vector<8x64xf32>
    %103 = vector.extract_strided_slice %100 {offsets = [0, 64], sizes = [8, 64], strides = [1, 1]} : vector<8x256xf32> to vector<8x64xf32>
    %104 = arith.mulf %103, %80 : vector<8x64xf32>
    %105 = vector.extract_strided_slice %100 {offsets = [0, 0], sizes = [8, 64], strides = [1, 1]} : vector<8x256xf32> to vector<8x64xf32>
    %106 = arith.mulf %105, %102 : vector<8x64xf32>
    %107 = arith.addf %104, %106 : vector<8x64xf32>
    %108 = vector.extract_strided_slice %100 {offsets = [0, 192], sizes = [8, 64], strides = [1, 1]} : vector<8x256xf32> to vector<8x64xf32>
    %109 = math.tanh %107 : vector<8x64xf32>
    %110 = arith.mulf %108, %109 : vector<8x64xf32>
    %111 = vector.extract_strided_slice %110 {offsets = [0, 0], sizes = [8, 32], strides = [1, 1]} : vector<8x64xf32> to vector<8x32xf32>
    %c3 = arith.constant 3 : index
    %c0_31 = arith.constant 0 : index
    %c0_32 = arith.constant 0 : index
    %112 = vector.load %arg19[%c3, %c0_31, %c0_32] : memref<8x8x32xf32, #tpu.memory_space<vmem>>, vector<1x8x32xf32>
    %113 = vector.shape_cast %112 : vector<1x8x32xf32> to vector<8x32xf32>
    %114 = vector.shape_cast %111 : vector<8x32xf32> to vector<1x8x32xf32>
    tpu.vector_store %arg19[%c3, %c0_31, %c0_32], %114 {strides = array<i32>} : memref<8x8x32xf32, #tpu.memory_space<vmem>>, vector<1x8x32xf32>,
    %115 = vector.extract_strided_slice %110 {offsets = [0, 32], sizes = [8, 32], strides = [1, 1]} : vector<8x64xf32> to vector<8x32xf32>
    %c4 = arith.constant 4 : index
    %c0_33 = arith.constant 0 : index
    %c0_34 = arith.constant 0 : index
    %116 = vector.load %arg20[%c4, %c0_33, %c0_34] : memref<8x8x32xf32, #tpu.memory_space<vmem>>, vector<1x8x32xf32>
    %117 = vector.shape_cast %116 : vector<1x8x32xf32> to vector<8x32xf32>
    %118 = vector.shape_cast %115 : vector<8x32xf32> to vector<1x8x32xf32>
    tpu.vector_store %arg20[%c4, %c0_33, %c0_34], %118 {strides = array<i32>} : memref<8x8x32xf32, #tpu.memory_space<vmem>>, vector<1x8x32xf32>,
    %119 = vector.extract_strided_slice %7 {offsets = [4, 0, 0], sizes = [1, 8, 256], strides = [1, 1, 1]} : vector<8x8x256xf32> to vector<1x8x256xf32>
    %120 = vector.shape_cast %119 : vector<1x8x256xf32> to vector<8x256xf32>
    %cst_35 = arith.constant dense<0.000000e+00> : vector<8x256xf32>
    %121 = tpu.matmul %110, %8, %cst_35 {dimension_numbers = #tpu.dot_dimension_numbers<[1], [0], [0], [1], [0, 0, 1, 1], [], []>} : vector<8x64xf32>, vector<64x256xf32>, vector<8x256xf32> -> vector<8x256xf32>
    %122 = arith.addf %120, %121 : vector<8x256xf32>
    %123 = arith.negf %122 : vector<8x256xf32>
    %124 = math.exp %123 : vector<8x256xf32>
    %cst_36 = arith.constant 1.000000e+00 : f32
    %125 = vector.broadcast %cst_36 : f32 to vector<8x256xf32>
    %126 = arith.addf %125, %124 : vector<8x256xf32>
    %127 = arith.divf %125, %126 : vector<8x256xf32>
    %128 = vector.extract_strided_slice %122 {offsets = [0, 128], sizes = [8, 64], strides = [1, 1]} : vector<8x256xf32> to vector<8x64xf32>
    %129 = math.tanh %128 : vector<8x64xf32>
    %130 = vector.extract_strided_slice %127 {offsets = [0, 64], sizes = [8, 64], strides = [1, 1]} : vector<8x256xf32> to vector<8x64xf32>
    %131 = arith.mulf %130, %107 : vector<8x64xf32>
    %132 = vector.extract_strided_slice %127 {offsets = [0, 0], sizes = [8, 64], strides = [1, 1]} : vector<8x256xf32> to vector<8x64xf32>
    %133 = arith.mulf %132, %129 : vector<8x64xf32>
    %134 = arith.addf %131, %133 : vector<8x64xf32>
    %135 = vector.extract_strided_slice %127 {offsets = [0, 192], sizes = [8, 64], strides = [1, 1]} : vector<8x256xf32> to vector<8x64xf32>
    %136 = math.tanh %134 : vector<8x64xf32>
    %137 = arith.mulf %135, %136 : vector<8x64xf32>
    %138 = vector.extract_strided_slice %137 {offsets = [0, 0], sizes = [8, 32], strides = [1, 1]} : vector<8x64xf32> to vector<8x32xf32>
    %c4_37 = arith.constant 4 : index
    %c0_38 = arith.constant 0 : index
    %c0_39 = arith.constant 0 : index
    %139 = vector.load %arg19[%c4_37, %c0_38, %c0_39] : memref<8x8x32xf32, #tpu.memory_space<vmem>>, vector<1x8x32xf32>
    %140 = vector.shape_cast %139 : vector<1x8x32xf32> to vector<8x32xf32>
    %141 = vector.shape_cast %138 : vector<8x32xf32> to vector<1x8x32xf32>
    tpu.vector_store %arg19[%c4_37, %c0_38, %c0_39], %141 {strides = array<i32>} : memref<8x8x32xf32, #tpu.memory_space<vmem>>, vector<1x8x32xf32>,
    %142 = vector.extract_strided_slice %137 {offsets = [0, 32], sizes = [8, 32], strides = [1, 1]} : vector<8x64xf32> to vector<8x32xf32>
    %c3_40 = arith.constant 3 : index
    %c0_41 = arith.constant 0 : index
    %c0_42 = arith.constant 0 : index
    %143 = vector.load %arg20[%c3_40, %c0_41, %c0_42] : memref<8x8x32xf32, #tpu.memory_space<vmem>>, vector<1x8x32xf32>
    %144 = vector.shape_cast %143 : vector<1x8x32xf32> to vector<8x32xf32>
    %145 = vector.shape_cast %142 : vector<8x32xf32> to vector<1x8x32xf32>
    tpu.vector_store %arg20[%c3_40, %c0_41, %c0_42], %145 {strides = array<i32>} : memref<8x8x32xf32, #tpu.memory_space<vmem>>, vector<1x8x32xf32>,
    %146 = vector.extract_strided_slice %7 {offsets = [5, 0, 0], sizes = [1, 8, 256], strides = [1, 1, 1]} : vector<8x8x256xf32> to vector<1x8x256xf32>
    %147 = vector.shape_cast %146 : vector<1x8x256xf32> to vector<8x256xf32>
    %cst_43 = arith.constant dense<0.000000e+00> : vector<8x256xf32>
    %148 = tpu.matmul %137, %8, %cst_43 {dimension_numbers = #tpu.dot_dimension_numbers<[1], [0], [0], [1], [0, 0, 1, 1], [], []>} : vector<8x64xf32>, vector<64x256xf32>, vector<8x256xf32> -> vector<8x256xf32>
    %149 = arith.addf %147, %148 : vector<8x256xf32>
    %150 = arith.negf %149 : vector<8x256xf32>
    %151 = math.exp %150 : vector<8x256xf32>
    %cst_44 = arith.constant 1.000000e+00 : f32
    %152 = vector.broadcast %cst_44 : f32 to vector<8x256xf32>
    %153 = arith.addf %152, %151 : vector<8x256xf32>
    %154 = arith.divf %152, %153 : vector<8x256xf32>
    %155 = vector.extract_strided_slice %149 {offsets = [0, 128], sizes = [8, 64], strides = [1, 1]} : vector<8x256xf32> to vector<8x64xf32>
    %156 = math.tanh %155 : vector<8x64xf32>
    %157 = vector.extract_strided_slice %154 {offsets = [0, 64], sizes = [8, 64], strides = [1, 1]} : vector<8x256xf32> to vector<8x64xf32>
    %158 = arith.mulf %157, %134 : vector<8x64xf32>
    %159 = vector.extract_strided_slice %154 {offsets = [0, 0], sizes = [8, 64], strides = [1, 1]} : vector<8x256xf32> to vector<8x64xf32>
    %160 = arith.mulf %159, %156 : vector<8x64xf32>
    %161 = arith.addf %158, %160 : vector<8x64xf32>
    %162 = vector.extract_strided_slice %154 {offsets = [0, 192], sizes = [8, 64], strides = [1, 1]} : vector<8x256xf32> to vector<8x64xf32>
    %163 = math.tanh %161 : vector<8x64xf32>
    %164 = arith.mulf %162, %163 : vector<8x64xf32>
    %165 = vector.extract_strided_slice %164 {offsets = [0, 0], sizes = [8, 32], strides = [1, 1]} : vector<8x64xf32> to vector<8x32xf32>
    %c5_45 = arith.constant 5 : index
    %c0_46 = arith.constant 0 : index
    %c0_47 = arith.constant 0 : index
    %166 = vector.load %arg19[%c5_45, %c0_46, %c0_47] : memref<8x8x32xf32, #tpu.memory_space<vmem>>, vector<1x8x32xf32>
    %167 = vector.shape_cast %166 : vector<1x8x32xf32> to vector<8x32xf32>
    %168 = vector.shape_cast %165 : vector<8x32xf32> to vector<1x8x32xf32>
    tpu.vector_store %arg19[%c5_45, %c0_46, %c0_47], %168 {strides = array<i32>} : memref<8x8x32xf32, #tpu.memory_space<vmem>>, vector<1x8x32xf32>,
    %169 = vector.extract_strided_slice %164 {offsets = [0, 32], sizes = [8, 32], strides = [1, 1]} : vector<8x64xf32> to vector<8x32xf32>
    %c2_48 = arith.constant 2 : index
    %c0_49 = arith.constant 0 : index
    %c0_50 = arith.constant 0 : index
    %170 = vector.load %arg20[%c2_48, %c0_49, %c0_50] : memref<8x8x32xf32, #tpu.memory_space<vmem>>, vector<1x8x32xf32>
    %171 = vector.shape_cast %170 : vector<1x8x32xf32> to vector<8x32xf32>
    %172 = vector.shape_cast %169 : vector<8x32xf32> to vector<1x8x32xf32>
    tpu.vector_store %arg20[%c2_48, %c0_49, %c0_50], %172 {strides = array<i32>} : memref<8x8x32xf32, #tpu.memory_space<vmem>>, vector<1x8x32xf32>,
    %173 = vector.extract_strided_slice %7 {offsets = [6, 0, 0], sizes = [1, 8, 256], strides = [1, 1, 1]} : vector<8x8x256xf32> to vector<1x8x256xf32>
    %174 = vector.shape_cast %173 : vector<1x8x256xf32> to vector<8x256xf32>
    %cst_51 = arith.constant dense<0.000000e+00> : vector<8x256xf32>
    %175 = tpu.matmul %164, %8, %cst_51 {dimension_numbers = #tpu.dot_dimension_numbers<[1], [0], [0], [1], [0, 0, 1, 1], [], []>} : vector<8x64xf32>, vector<64x256xf32>, vector<8x256xf32> -> vector<8x256xf32>
    %176 = arith.addf %174, %175 : vector<8x256xf32>
    %177 = arith.negf %176 : vector<8x256xf32>
    %178 = math.exp %177 : vector<8x256xf32>
    %cst_52 = arith.constant 1.000000e+00 : f32
    %179 = vector.broadcast %cst_52 : f32 to vector<8x256xf32>
    %180 = arith.addf %179, %178 : vector<8x256xf32>
    %181 = arith.divf %179, %180 : vector<8x256xf32>
    %182 = vector.extract_strided_slice %176 {offsets = [0, 128], sizes = [8, 64], strides = [1, 1]} : vector<8x256xf32> to vector<8x64xf32>
    %183 = math.tanh %182 : vector<8x64xf32>
    %184 = vector.extract_strided_slice %181 {offsets = [0, 64], sizes = [8, 64], strides = [1, 1]} : vector<8x256xf32> to vector<8x64xf32>
    %185 = arith.mulf %184, %161 : vector<8x64xf32>
    %186 = vector.extract_strided_slice %181 {offsets = [0, 0], sizes = [8, 64], strides = [1, 1]} : vector<8x256xf32> to vector<8x64xf32>
    %187 = arith.mulf %186, %183 : vector<8x64xf32>
    %188 = arith.addf %185, %187 : vector<8x64xf32>
    %189 = vector.extract_strided_slice %181 {offsets = [0, 192], sizes = [8, 64], strides = [1, 1]} : vector<8x256xf32> to vector<8x64xf32>
    %190 = math.tanh %188 : vector<8x64xf32>
    %191 = arith.mulf %189, %190 : vector<8x64xf32>
    %192 = vector.extract_strided_slice %191 {offsets = [0, 0], sizes = [8, 32], strides = [1, 1]} : vector<8x64xf32> to vector<8x32xf32>
    %c6_53 = arith.constant 6 : index
    %c0_54 = arith.constant 0 : index
    %c0_55 = arith.constant 0 : index
    %193 = vector.load %arg19[%c6_53, %c0_54, %c0_55] : memref<8x8x32xf32, #tpu.memory_space<vmem>>, vector<1x8x32xf32>
    %194 = vector.shape_cast %193 : vector<1x8x32xf32> to vector<8x32xf32>
    %195 = vector.shape_cast %192 : vector<8x32xf32> to vector<1x8x32xf32>
    tpu.vector_store %arg19[%c6_53, %c0_54, %c0_55], %195 {strides = array<i32>} : memref<8x8x32xf32, #tpu.memory_space<vmem>>, vector<1x8x32xf32>,
    %196 = vector.extract_strided_slice %191 {offsets = [0, 32], sizes = [8, 32], strides = [1, 1]} : vector<8x64xf32> to vector<8x32xf32>
    %c1_56 = arith.constant 1 : index
    %c0_57 = arith.constant 0 : index
    %c0_58 = arith.constant 0 : index
    %197 = vector.load %arg20[%c1_56, %c0_57, %c0_58] : memref<8x8x32xf32, #tpu.memory_space<vmem>>, vector<1x8x32xf32>
    %198 = vector.shape_cast %197 : vector<1x8x32xf32> to vector<8x32xf32>
    %199 = vector.shape_cast %196 : vector<8x32xf32> to vector<1x8x32xf32>
    tpu.vector_store %arg20[%c1_56, %c0_57, %c0_58], %199 {strides = array<i32>} : memref<8x8x32xf32, #tpu.memory_space<vmem>>, vector<1x8x32xf32>,
    %200 = vector.extract_strided_slice %7 {offsets = [7, 0, 0], sizes = [1, 8, 256], strides = [1, 1, 1]} : vector<8x8x256xf32> to vector<1x8x256xf32>
    %201 = vector.shape_cast %200 : vector<1x8x256xf32> to vector<8x256xf32>
    %cst_59 = arith.constant dense<0.000000e+00> : vector<8x256xf32>
    %202 = tpu.matmul %191, %8, %cst_59 {dimension_numbers = #tpu.dot_dimension_numbers<[1], [0], [0], [1], [0, 0, 1, 1], [], []>} : vector<8x64xf32>, vector<64x256xf32>, vector<8x256xf32> -> vector<8x256xf32>
    %203 = arith.addf %201, %202 : vector<8x256xf32>
    %204 = arith.negf %203 : vector<8x256xf32>
    %205 = math.exp %204 : vector<8x256xf32>
    %cst_60 = arith.constant 1.000000e+00 : f32
    %206 = vector.broadcast %cst_60 : f32 to vector<8x256xf32>
    %207 = arith.addf %206, %205 : vector<8x256xf32>
    %208 = arith.divf %206, %207 : vector<8x256xf32>
    %209 = vector.extract_strided_slice %203 {offsets = [0, 128], sizes = [8, 64], strides = [1, 1]} : vector<8x256xf32> to vector<8x64xf32>
    %210 = math.tanh %209 : vector<8x64xf32>
    %211 = vector.extract_strided_slice %208 {offsets = [0, 64], sizes = [8, 64], strides = [1, 1]} : vector<8x256xf32> to vector<8x64xf32>
    %212 = arith.mulf %211, %188 : vector<8x64xf32>
    %213 = vector.extract_strided_slice %208 {offsets = [0, 0], sizes = [8, 64], strides = [1, 1]} : vector<8x256xf32> to vector<8x64xf32>
    %214 = arith.mulf %213, %210 : vector<8x64xf32>
    %215 = arith.addf %212, %214 : vector<8x64xf32>
    %216 = vector.extract_strided_slice %208 {offsets = [0, 192], sizes = [8, 64], strides = [1, 1]} : vector<8x256xf32> to vector<8x64xf32>
    %217 = math.tanh %215 : vector<8x64xf32>
    %218 = arith.mulf %216, %217 : vector<8x64xf32>
    %219 = vector.extract_strided_slice %218 {offsets = [0, 0], sizes = [8, 32], strides = [1, 1]} : vector<8x64xf32> to vector<8x32xf32>
    %c7_61 = arith.constant 7 : index
    %c0_62 = arith.constant 0 : index
    %c0_63 = arith.constant 0 : index
    %220 = vector.load %arg19[%c7_61, %c0_62, %c0_63] : memref<8x8x32xf32, #tpu.memory_space<vmem>>, vector<1x8x32xf32>
    %221 = vector.shape_cast %220 : vector<1x8x32xf32> to vector<8x32xf32>
    %222 = vector.shape_cast %219 : vector<8x32xf32> to vector<1x8x32xf32>
    tpu.vector_store %arg19[%c7_61, %c0_62, %c0_63], %222 {strides = array<i32>} : memref<8x8x32xf32, #tpu.memory_space<vmem>>, vector<1x8x32xf32>,
    %223 = vector.extract_strided_slice %218 {offsets = [0, 32], sizes = [8, 32], strides = [1, 1]} : vector<8x64xf32> to vector<8x32xf32>
    %c0_64 = arith.constant 0 : index
    %c0_65 = arith.constant 0 : index
    %c0_66 = arith.constant 0 : index
    %224 = vector.load %arg20[%c0_64, %c0_65, %c0_66] : memref<8x8x32xf32, #tpu.memory_space<vmem>>, vector<1x8x32xf32>
    %225 = vector.shape_cast %224 : vector<1x8x32xf32> to vector<8x32xf32>
    %226 = vector.shape_cast %223 : vector<8x32xf32> to vector<1x8x32xf32>
    tpu.vector_store %arg20[%c0_64, %c0_65, %c0_66], %226 {strides = array<i32>} : memref<8x8x32xf32, #tpu.memory_space<vmem>>, vector<1x8x32xf32>,
    %c0_67 = arith.constant 0 : index
    %c0_68 = arith.constant 0 : index
    %c0_69 = arith.constant 0 : index
    %227 = vector.load %arg19[%c0_67, %c0_68, %c0_69] : memref<8x8x32xf32, #tpu.memory_space<vmem>>, vector<8x8x32xf32>
    %228 = vector.shape_cast %227 : vector<8x8x32xf32> to vector<64x32xf32>
    %c0_70 = arith.constant 0 : index
    %c0_71 = arith.constant 0 : index
    %c0_72 = arith.constant 0 : index
    %229 = vector.load %arg20[%c0_70, %c0_71, %c0_72] : memref<8x8x32xf32, #tpu.memory_space<vmem>>, vector<8x8x32xf32>
    %230 = vector.shape_cast %229 : vector<8x8x32xf32> to vector<64x32xf32>
    %c0_73 = arith.constant 0 : index
    %c0_74 = arith.constant 0 : index
    %231 = vector.load %arg4[%c0_73, %c0_74] : memref<32x128xf32, #tpu.memory_space<vmem>>, vector<32x128xf32>
    %cst_75 = arith.constant dense<0.000000e+00> : vector<64x128xf32>
    %232 = tpu.matmul %228, %231, %cst_75 {dimension_numbers = #tpu.dot_dimension_numbers<[1], [0], [0], [1], [0, 0, 1, 1], [], []>} : vector<64x32xf32>, vector<32x128xf32>, vector<64x128xf32> -> vector<64x128xf32>
    %c0_76 = arith.constant 0 : index
    %c0_77 = arith.constant 0 : index
    %233 = vector.load %arg5[%c0_76, %c0_77] : memref<32x128xf32, #tpu.memory_space<vmem>>, vector<32x128xf32>
    %cst_78 = arith.constant dense<0.000000e+00> : vector<64x128xf32>
    %234 = tpu.matmul %230, %233, %cst_78 {dimension_numbers = #tpu.dot_dimension_numbers<[1], [0], [0], [1], [0, 0, 1, 1], [], []>} : vector<64x32xf32>, vector<32x128xf32>, vector<64x128xf32> -> vector<64x128xf32>
    %235 = arith.addf %232, %234 : vector<64x128xf32>
    %c0_79 = arith.constant 0 : index
    %c0_80 = arith.constant 0 : index
    %236 = vector.load %arg7[%c0_79, %c0_80] : memref<1x128xf32, #tpu.memory_space<vmem>>, vector<1x128xf32>
    %237 = vector.broadcast %236 : vector<1x128xf32> to vector<64x128xf32>
    %238 = arith.addf %235, %237 : vector<64x128xf32>
    %239 = vector.shape_cast %238 : vector<64x128xf32> to vector<8x8x128xf32>
    %c0_81 = arith.constant 0 : index
    %c0_82 = arith.constant 0 : index
    %240 = vector.load %arg6[%c0_81, %c0_82] : memref<32x128xf32, #tpu.memory_space<vmem>>, vector<32x128xf32>
    %cst_83 = arith.constant 0.000000e+00 : f32
    %241 = vector.broadcast %cst_83 : f32 to vector<8x32xf32>
    %cst_84 = arith.constant 0.000000e+00 : f32
    %242 = vector.broadcast %cst_84 : f32 to vector<8x32xf32>
    %243 = vector.extract_strided_slice %239 {offsets = [0, 0, 0], sizes = [1, 8, 128], strides = [1, 1, 1]} : vector<8x8x128xf32> to vector<1x8x128xf32>
    %244 = vector.shape_cast %243 : vector<1x8x128xf32> to vector<8x128xf32>
    %cst_85 = arith.constant dense<0.000000e+00> : vector<8x128xf32>
    %245 = tpu.matmul %241, %240, %cst_85 {dimension_numbers = #tpu.dot_dimension_numbers<[1], [0], [0], [1], [0, 0, 1, 1], [], []>} : vector<8x32xf32>, vector<32x128xf32>, vector<8x128xf32> -> vector<8x128xf32>
    %246 = arith.addf %244, %245 : vector<8x128xf32>
    %247 = arith.negf %246 : vector<8x128xf32>
    %248 = math.exp %247 : vector<8x128xf32>
    %cst_86 = arith.constant 1.000000e+00 : f32
    %249 = vector.broadcast %cst_86 : f32 to vector<8x128xf32>
    %250 = arith.addf %249, %248 : vector<8x128xf32>
    %251 = arith.divf %249, %250 : vector<8x128xf32>
    %252 = vector.extract_strided_slice %246 {offsets = [0, 64], sizes = [8, 32], strides = [1, 1]} : vector<8x128xf32> to vector<8x32xf32>
    %253 = math.tanh %252 : vector<8x32xf32>
    %254 = vector.extract_strided_slice %251 {offsets = [0, 32], sizes = [8, 32], strides = [1, 1]} : vector<8x128xf32> to vector<8x32xf32>
    %255 = arith.mulf %254, %242 : vector<8x32xf32>
    %256 = vector.extract_strided_slice %251 {offsets = [0, 0], sizes = [8, 32], strides = [1, 1]} : vector<8x128xf32> to vector<8x32xf32>
    %257 = arith.mulf %256, %253 : vector<8x32xf32>
    %258 = arith.addf %255, %257 : vector<8x32xf32>
    %259 = vector.extract_strided_slice %251 {offsets = [0, 96], sizes = [8, 32], strides = [1, 1]} : vector<8x128xf32> to vector<8x32xf32>
    %260 = math.tanh %258 : vector<8x32xf32>
    %261 = arith.mulf %259, %260 : vector<8x32xf32>
    %262 = vector.extract_strided_slice %239 {offsets = [1, 0, 0], sizes = [1, 8, 128], strides = [1, 1, 1]} : vector<8x8x128xf32> to vector<1x8x128xf32>
    %263 = vector.shape_cast %262 : vector<1x8x128xf32> to vector<8x128xf32>
    %cst_87 = arith.constant dense<0.000000e+00> : vector<8x128xf32>
    %264 = tpu.matmul %261, %240, %cst_87 {dimension_numbers = #tpu.dot_dimension_numbers<[1], [0], [0], [1], [0, 0, 1, 1], [], []>} : vector<8x32xf32>, vector<32x128xf32>, vector<8x128xf32> -> vector<8x128xf32>
    %265 = arith.addf %263, %264 : vector<8x128xf32>
    %266 = arith.negf %265 : vector<8x128xf32>
    %267 = math.exp %266 : vector<8x128xf32>
    %cst_88 = arith.constant 1.000000e+00 : f32
    %268 = vector.broadcast %cst_88 : f32 to vector<8x128xf32>
    %269 = arith.addf %268, %267 : vector<8x128xf32>
    %270 = arith.divf %268, %269 : vector<8x128xf32>
    %271 = vector.extract_strided_slice %265 {offsets = [0, 64], sizes = [8, 32], strides = [1, 1]} : vector<8x128xf32> to vector<8x32xf32>
    %272 = math.tanh %271 : vector<8x32xf32>
    %273 = vector.extract_strided_slice %270 {offsets = [0, 32], sizes = [8, 32], strides = [1, 1]} : vector<8x128xf32> to vector<8x32xf32>
    %274 = arith.mulf %273, %258 : vector<8x32xf32>
    %275 = vector.extract_strided_slice %270 {offsets = [0, 0], sizes = [8, 32], strides = [1, 1]} : vector<8x128xf32> to vector<8x32xf32>
    %276 = arith.mulf %275, %272 : vector<8x32xf32>
    %277 = arith.addf %274, %276 : vector<8x32xf32>
    %278 = vector.extract_strided_slice %270 {offsets = [0, 96], sizes = [8, 32], strides = [1, 1]} : vector<8x128xf32> to vector<8x32xf32>
    %279 = math.tanh %277 : vector<8x32xf32>
    %280 = arith.mulf %278, %279 : vector<8x32xf32>
    %281 = vector.extract_strided_slice %239 {offsets = [2, 0, 0], sizes = [1, 8, 128], strides = [1, 1, 1]} : vector<8x8x128xf32> to vector<1x8x128xf32>
    %282 = vector.shape_cast %281 : vector<1x8x128xf32> to vector<8x128xf32>
    %cst_89 = arith.constant dense<0.000000e+00> : vector<8x128xf32>
    %283 = tpu.matmul %280, %240, %cst_89 {dimension_numbers = #tpu.dot_dimension_numbers<[1], [0], [0], [1], [0, 0, 1, 1], [], []>} : vector<8x32xf32>, vector<32x128xf32>, vector<8x128xf32> -> vector<8x128xf32>
    %284 = arith.addf %282, %283 : vector<8x128xf32>
    %285 = arith.negf %284 : vector<8x128xf32>
    %286 = math.exp %285 : vector<8x128xf32>
    %cst_90 = arith.constant 1.000000e+00 : f32
    %287 = vector.broadcast %cst_90 : f32 to vector<8x128xf32>
    %288 = arith.addf %287, %286 : vector<8x128xf32>
    %289 = arith.divf %287, %288 : vector<8x128xf32>
    %290 = vector.extract_strided_slice %284 {offsets = [0, 64], sizes = [8, 32], strides = [1, 1]} : vector<8x128xf32> to vector<8x32xf32>
    %291 = math.tanh %290 : vector<8x32xf32>
    %292 = vector.extract_strided_slice %289 {offsets = [0, 32], sizes = [8, 32], strides = [1, 1]} : vector<8x128xf32> to vector<8x32xf32>
    %293 = arith.mulf %292, %277 : vector<8x32xf32>
    %294 = vector.extract_strided_slice %289 {offsets = [0, 0], sizes = [8, 32], strides = [1, 1]} : vector<8x128xf32> to vector<8x32xf32>
    %295 = arith.mulf %294, %291 : vector<8x32xf32>
    %296 = arith.addf %293, %295 : vector<8x32xf32>
    %297 = vector.extract_strided_slice %289 {offsets = [0, 96], sizes = [8, 32], strides = [1, 1]} : vector<8x128xf32> to vector<8x32xf32>
    %298 = math.tanh %296 : vector<8x32xf32>
    %299 = arith.mulf %297, %298 : vector<8x32xf32>
    %300 = vector.extract_strided_slice %239 {offsets = [3, 0, 0], sizes = [1, 8, 128], strides = [1, 1, 1]} : vector<8x8x128xf32> to vector<1x8x128xf32>
    %301 = vector.shape_cast %300 : vector<1x8x128xf32> to vector<8x128xf32>
    %cst_91 = arith.constant dense<0.000000e+00> : vector<8x128xf32>
    %302 = tpu.matmul %299, %240, %cst_91 {dimension_numbers = #tpu.dot_dimension_numbers<[1], [0], [0], [1], [0, 0, 1, 1], [], []>} : vector<8x32xf32>, vector<32x128xf32>, vector<8x128xf32> -> vector<8x128xf32>
    %303 = arith.addf %301, %302 : vector<8x128xf32>
    %304 = arith.negf %303 : vector<8x128xf32>
    %305 = math.exp %304 : vector<8x128xf32>
    %cst_92 = arith.constant 1.000000e+00 : f32
    %306 = vector.broadcast %cst_92 : f32 to vector<8x128xf32>
    %307 = arith.addf %306, %305 : vector<8x128xf32>
    %308 = arith.divf %306, %307 : vector<8x128xf32>
    %309 = vector.extract_strided_slice %303 {offsets = [0, 64], sizes = [8, 32], strides = [1, 1]} : vector<8x128xf32> to vector<8x32xf32>
    %310 = math.tanh %309 : vector<8x32xf32>
    %311 = vector.extract_strided_slice %308 {offsets = [0, 32], sizes = [8, 32], strides = [1, 1]} : vector<8x128xf32> to vector<8x32xf32>
    %312 = arith.mulf %311, %296 : vector<8x32xf32>
    %313 = vector.extract_strided_slice %308 {offsets = [0, 0], sizes = [8, 32], strides = [1, 1]} : vector<8x128xf32> to vector<8x32xf32>
    %314 = arith.mulf %313, %310 : vector<8x32xf32>
    %315 = arith.addf %312, %314 : vector<8x32xf32>
    %316 = vector.extract_strided_slice %308 {offsets = [0, 96], sizes = [8, 32], strides = [1, 1]} : vector<8x128xf32> to vector<8x32xf32>
    %317 = math.tanh %315 : vector<8x32xf32>
    %318 = arith.mulf %316, %317 : vector<8x32xf32>
    %319 = vector.extract_strided_slice %239 {offsets = [4, 0, 0], sizes = [1, 8, 128], strides = [1, 1, 1]} : vector<8x8x128xf32> to vector<1x8x128xf32>
    %320 = vector.shape_cast %319 : vector<1x8x128xf32> to vector<8x128xf32>
    %cst_93 = arith.constant dense<0.000000e+00> : vector<8x128xf32>
    %321 = tpu.matmul %318, %240, %cst_93 {dimension_numbers = #tpu.dot_dimension_numbers<[1], [0], [0], [1], [0, 0, 1, 1], [], []>} : vector<8x32xf32>, vector<32x128xf32>, vector<8x128xf32> -> vector<8x128xf32>
    %322 = arith.addf %320, %321 : vector<8x128xf32>
    %323 = arith.negf %322 : vector<8x128xf32>
    %324 = math.exp %323 : vector<8x128xf32>
    %cst_94 = arith.constant 1.000000e+00 : f32
    %325 = vector.broadcast %cst_94 : f32 to vector<8x128xf32>
    %326 = arith.addf %325, %324 : vector<8x128xf32>
    %327 = arith.divf %325, %326 : vector<8x128xf32>
    %328 = vector.extract_strided_slice %322 {offsets = [0, 64], sizes = [8, 32], strides = [1, 1]} : vector<8x128xf32> to vector<8x32xf32>
    %329 = math.tanh %328 : vector<8x32xf32>
    %330 = vector.extract_strided_slice %327 {offsets = [0, 32], sizes = [8, 32], strides = [1, 1]} : vector<8x128xf32> to vector<8x32xf32>
    %331 = arith.mulf %330, %315 : vector<8x32xf32>
    %332 = vector.extract_strided_slice %327 {offsets = [0, 0], sizes = [8, 32], strides = [1, 1]} : vector<8x128xf32> to vector<8x32xf32>
    %333 = arith.mulf %332, %329 : vector<8x32xf32>
    %334 = arith.addf %331, %333 : vector<8x32xf32>
    %335 = vector.extract_strided_slice %327 {offsets = [0, 96], sizes = [8, 32], strides = [1, 1]} : vector<8x128xf32> to vector<8x32xf32>
    %336 = math.tanh %334 : vector<8x32xf32>
    %337 = arith.mulf %335, %336 : vector<8x32xf32>
    %338 = vector.extract_strided_slice %239 {offsets = [5, 0, 0], sizes = [1, 8, 128], strides = [1, 1, 1]} : vector<8x8x128xf32> to vector<1x8x128xf32>
    %339 = vector.shape_cast %338 : vector<1x8x128xf32> to vector<8x128xf32>
    %cst_95 = arith.constant dense<0.000000e+00> : vector<8x128xf32>
    %340 = tpu.matmul %337, %240, %cst_95 {dimension_numbers = #tpu.dot_dimension_numbers<[1], [0], [0], [1], [0, 0, 1, 1], [], []>} : vector<8x32xf32>, vector<32x128xf32>, vector<8x128xf32> -> vector<8x128xf32>
    %341 = arith.addf %339, %340 : vector<8x128xf32>
    %342 = arith.negf %341 : vector<8x128xf32>
    %343 = math.exp %342 : vector<8x128xf32>
    %cst_96 = arith.constant 1.000000e+00 : f32
    %344 = vector.broadcast %cst_96 : f32 to vector<8x128xf32>
    %345 = arith.addf %344, %343 : vector<8x128xf32>
    %346 = arith.divf %344, %345 : vector<8x128xf32>
    %347 = vector.extract_strided_slice %341 {offsets = [0, 64], sizes = [8, 32], strides = [1, 1]} : vector<8x128xf32> to vector<8x32xf32>
    %348 = math.tanh %347 : vector<8x32xf32>
    %349 = vector.extract_strided_slice %346 {offsets = [0, 32], sizes = [8, 32], strides = [1, 1]} : vector<8x128xf32> to vector<8x32xf32>
    %350 = arith.mulf %349, %334 : vector<8x32xf32>
    %351 = vector.extract_strided_slice %346 {offsets = [0, 0], sizes = [8, 32], strides = [1, 1]} : vector<8x128xf32> to vector<8x32xf32>
    %352 = arith.mulf %351, %348 : vector<8x32xf32>
    %353 = arith.addf %350, %352 : vector<8x32xf32>
    %354 = vector.extract_strided_slice %346 {offsets = [0, 96], sizes = [8, 32], strides = [1, 1]} : vector<8x128xf32> to vector<8x32xf32>
    %355 = math.tanh %353 : vector<8x32xf32>
    %356 = arith.mulf %354, %355 : vector<8x32xf32>
    %357 = vector.extract_strided_slice %239 {offsets = [6, 0, 0], sizes = [1, 8, 128], strides = [1, 1, 1]} : vector<8x8x128xf32> to vector<1x8x128xf32>
    %358 = vector.shape_cast %357 : vector<1x8x128xf32> to vector<8x128xf32>
    %cst_97 = arith.constant dense<0.000000e+00> : vector<8x128xf32>
    %359 = tpu.matmul %356, %240, %cst_97 {dimension_numbers = #tpu.dot_dimension_numbers<[1], [0], [0], [1], [0, 0, 1, 1], [], []>} : vector<8x32xf32>, vector<32x128xf32>, vector<8x128xf32> -> vector<8x128xf32>
    %360 = arith.addf %358, %359 : vector<8x128xf32>
    %361 = arith.negf %360 : vector<8x128xf32>
    %362 = math.exp %361 : vector<8x128xf32>
    %cst_98 = arith.constant 1.000000e+00 : f32
    %363 = vector.broadcast %cst_98 : f32 to vector<8x128xf32>
    %364 = arith.addf %363, %362 : vector<8x128xf32>
    %365 = arith.divf %363, %364 : vector<8x128xf32>
    %366 = vector.extract_strided_slice %360 {offsets = [0, 64], sizes = [8, 32], strides = [1, 1]} : vector<8x128xf32> to vector<8x32xf32>
    %367 = math.tanh %366 : vector<8x32xf32>
    %368 = vector.extract_strided_slice %365 {offsets = [0, 32], sizes = [8, 32], strides = [1, 1]} : vector<8x128xf32> to vector<8x32xf32>
    %369 = arith.mulf %368, %353 : vector<8x32xf32>
    %370 = vector.extract_strided_slice %365 {offsets = [0, 0], sizes = [8, 32], strides = [1, 1]} : vector<8x128xf32> to vector<8x32xf32>
    %371 = arith.mulf %370, %367 : vector<8x32xf32>
    %372 = arith.addf %369, %371 : vector<8x32xf32>
    %373 = vector.extract_strided_slice %365 {offsets = [0, 96], sizes = [8, 32], strides = [1, 1]} : vector<8x128xf32> to vector<8x32xf32>
    %374 = math.tanh %372 : vector<8x32xf32>
    %375 = arith.mulf %373, %374 : vector<8x32xf32>
    %376 = vector.extract_strided_slice %239 {offsets = [7, 0, 0], sizes = [1, 8, 128], strides = [1, 1, 1]} : vector<8x8x128xf32> to vector<1x8x128xf32>
    %377 = vector.shape_cast %376 : vector<1x8x128xf32> to vector<8x128xf32>
    %cst_99 = arith.constant dense<0.000000e+00> : vector<8x128xf32>
    %378 = tpu.matmul %375, %240, %cst_99 {dimension_numbers = #tpu.dot_dimension_numbers<[1], [0], [0], [1], [0, 0, 1, 1], [], []>} : vector<8x32xf32>, vector<32x128xf32>, vector<8x128xf32> -> vector<8x128xf32>
    %379 = arith.addf %377, %378 : vector<8x128xf32>
    %380 = arith.negf %379 : vector<8x128xf32>
    %381 = math.exp %380 : vector<8x128xf32>
    %cst_100 = arith.constant 1.000000e+00 : f32
    %382 = vector.broadcast %cst_100 : f32 to vector<8x128xf32>
    %383 = arith.addf %382, %381 : vector<8x128xf32>
    %384 = arith.divf %382, %383 : vector<8x128xf32>
    %385 = vector.extract_strided_slice %379 {offsets = [0, 64], sizes = [8, 32], strides = [1, 1]} : vector<8x128xf32> to vector<8x32xf32>
    %386 = math.tanh %385 : vector<8x32xf32>
    %387 = vector.extract_strided_slice %384 {offsets = [0, 32], sizes = [8, 32], strides = [1, 1]} : vector<8x128xf32> to vector<8x32xf32>
    %388 = arith.mulf %387, %372 : vector<8x32xf32>
    %389 = vector.extract_strided_slice %384 {offsets = [0, 0], sizes = [8, 32], strides = [1, 1]} : vector<8x128xf32> to vector<8x32xf32>
    %390 = arith.mulf %389, %386 : vector<8x32xf32>
    %391 = arith.addf %388, %390 : vector<8x32xf32>
    %392 = vector.extract_strided_slice %384 {offsets = [0, 96], sizes = [8, 32], strides = [1, 1]} : vector<8x128xf32> to vector<8x32xf32>
    %393 = math.tanh %391 : vector<8x32xf32>
    %394 = arith.mulf %392, %393 : vector<8x32xf32>
    %c7_101 = arith.constant 7 : index
    %c0_102 = arith.constant 0 : index
    %c0_103 = arith.constant 0 : index
    %395 = vector.load %arg19[%c7_101, %c0_102, %c0_103] : memref<8x8x32xf32, #tpu.memory_space<vmem>>, vector<1x8x32xf32>
    %396 = vector.shape_cast %395 : vector<1x8x32xf32> to vector<8x32xf32>
    %c0_104 = arith.constant 0 : index
    %c0_105 = arith.constant 0 : index
    %397 = vector.load %arg8[%c0_104, %c0_105] : memref<32x128xf32, #tpu.memory_space<vmem>>, vector<32x128xf32>
    %cst_106 = arith.constant dense<0.000000e+00> : vector<8x128xf32>
    %398 = tpu.matmul %396, %397, %cst_106 {dimension_numbers = #tpu.dot_dimension_numbers<[1], [0], [0], [1], [0, 0, 1, 1], [], []>} : vector<8x32xf32>, vector<32x128xf32>, vector<8x128xf32> -> vector<8x128xf32>
    %c7_107 = arith.constant 7 : index
    %c0_108 = arith.constant 0 : index
    %c0_109 = arith.constant 0 : index
    %399 = vector.load %arg20[%c7_107, %c0_108, %c0_109] : memref<8x8x32xf32, #tpu.memory_space<vmem>>, vector<1x8x32xf32>
    %400 = vector.shape_cast %399 : vector<1x8x32xf32> to vector<8x32xf32>
    %c0_110 = arith.constant 0 : index
    %c0_111 = arith.constant 0 : index
    %401 = vector.load %arg9[%c0_110, %c0_111] : memref<32x128xf32, #tpu.memory_space<vmem>>, vector<32x128xf32>
    %cst_112 = arith.constant dense<0.000000e+00> : vector<8x128xf32>
    %402 = tpu.matmul %400, %401, %cst_112 {dimension_numbers = #tpu.dot_dimension_numbers<[1], [0], [0], [1], [0, 0, 1, 1], [], []>} : vector<8x32xf32>, vector<32x128xf32>, vector<8x128xf32> -> vector<8x128xf32>
    %403 = arith.addf %398, %402 : vector<8x128xf32>
    %c0_113 = arith.constant 0 : index
    %c0_114 = arith.constant 0 : index
    %404 = vector.load %arg10[%c0_113, %c0_114] : memref<1x128xf32, #tpu.memory_space<vmem>>, vector<1x128xf32>
    %405 = vector.broadcast %404 : vector<1x128xf32> to vector<8x128xf32>
    %406 = arith.addf %403, %405 : vector<8x128xf32>
    %407 = arith.negf %406 : vector<8x128xf32>
    %408 = math.exp %407 : vector<8x128xf32>
    %cst_115 = arith.constant 1.000000e+00 : f32
    %409 = vector.broadcast %cst_115 : f32 to vector<8x128xf32>
    %410 = arith.addf %409, %408 : vector<8x128xf32>
    %411 = arith.divf %409, %410 : vector<8x128xf32>
    %412 = vector.extract_strided_slice %411 {offsets = [0, 0], sizes = [8, 32], strides = [1, 1]} : vector<8x128xf32> to vector<8x32xf32>
    %413 = vector.extract_strided_slice %406 {offsets = [0, 64], sizes = [8, 32], strides = [1, 1]} : vector<8x128xf32> to vector<8x32xf32>
    %414 = math.tanh %413 : vector<8x32xf32>
    %415 = arith.mulf %412, %414 : vector<8x32xf32>
    %416 = vector.extract_strided_slice %411 {offsets = [0, 96], sizes = [8, 32], strides = [1, 1]} : vector<8x128xf32> to vector<8x32xf32>
    %417 = math.tanh %415 : vector<8x32xf32>
    %418 = arith.mulf %416, %417 : vector<8x32xf32>
    %c0_116 = arith.constant 0 : index
    %c0_117 = arith.constant 0 : index
    %419 = vector.load %arg11[%c0_116, %c0_117] : memref<32x64xf32, #tpu.memory_space<vmem>>, vector<32x64xf32>
    %cst_118 = arith.constant dense<0.000000e+00> : vector<8x64xf32>
    %420 = tpu.matmul %394, %419, %cst_118 {dimension_numbers = #tpu.dot_dimension_numbers<[1], [0], [0], [1], [0, 0, 1, 1], [], []>} : vector<8x32xf32>, vector<32x64xf32>, vector<8x64xf32> -> vector<8x64xf32>
    %c0_119 = arith.constant 0 : index
    %c0_120 = arith.constant 0 : index
    %421 = vector.load %arg12[%c0_119, %c0_120] : memref<32x64xf32, #tpu.memory_space<vmem>>, vector<32x64xf32>
    %cst_121 = arith.constant dense<0.000000e+00> : vector<8x64xf32>
    %422 = tpu.matmul %418, %421, %cst_121 {dimension_numbers = #tpu.dot_dimension_numbers<[1], [0], [0], [1], [0, 0, 1, 1], [], []>} : vector<8x32xf32>, vector<32x64xf32>, vector<8x64xf32> -> vector<8x64xf32>
    %423 = arith.addf %420, %422 : vector<8x64xf32>
    %c0_122 = arith.constant 0 : index
    %c0_123 = arith.constant 0 : index
    %424 = vector.load %arg13[%c0_122, %c0_123] : memref<1x64xf32, #tpu.memory_space<vmem>>, vector<1x64xf32>
    %425 = vector.broadcast %424 : vector<1x64xf32> to vector<8x64xf32>
    %426 = arith.addf %423, %425 : vector<8x64xf32>
    %cst_124 = arith.constant 0.000000e+00 : f32
    %427 = vector.broadcast %cst_124 : f32 to vector<8x64xf32>
    %428 = arith.maximumf %426, %427 : vector<8x64xf32>
    %c0_125 = arith.constant 0 : index
    %c0_126 = arith.constant 0 : index
    %429 = vector.load %arg14[%c0_125, %c0_126] : memref<64x128xf32, #tpu.memory_space<vmem>>, vector<64x128xf32>
    %cst_127 = arith.constant dense<0.000000e+00> : vector<8x128xf32>
    %430 = tpu.matmul %428, %429, %cst_127 {dimension_numbers = #tpu.dot_dimension_numbers<[1], [0], [0], [1], [0, 0, 1, 1], [], []>} : vector<8x64xf32>, vector<64x128xf32>, vector<8x128xf32> -> vector<8x128xf32>
    %c0_128 = arith.constant 0 : index
    %c0_129 = arith.constant 0 : index
    %431 = vector.load %arg15[%c0_128, %c0_129] : memref<1x128xf32, #tpu.memory_space<vmem>>, vector<1x128xf32>
    %432 = vector.broadcast %431 : vector<1x128xf32> to vector<8x128xf32>
    %433 = arith.addf %430, %432 : vector<8x128xf32>
    %cst_130 = arith.constant 0.000000e+00 : f32
    %434 = vector.broadcast %cst_130 : f32 to vector<8x128xf32>
    %435 = arith.maximumf %433, %434 : vector<8x128xf32>
    %c0_131 = arith.constant 0 : index
    %c0_132 = arith.constant 0 : index
    %436 = vector.load %arg16[%c0_131, %c0_132] : memref<128x5xf32, #tpu.memory_space<vmem>>, vector<128x5xf32>
    %cst_133 = arith.constant dense<0.000000e+00> : vector<8x5xf32>
    %437 = tpu.matmul %435, %436, %cst_133 {dimension_numbers = #tpu.dot_dimension_numbers<[1], [0], [0], [1], [0, 0, 1, 1], [], []>} : vector<8x128xf32>, vector<128x5xf32>, vector<8x5xf32> -> vector<8x5xf32>
    %c0_134 = arith.constant 0 : index
    %c0_135 = arith.constant 0 : index
    %438 = vector.load %arg17[%c0_134, %c0_135] : memref<1x5xf32, #tpu.memory_space<vmem>>, vector<1x5xf32>
    %439 = vector.broadcast %438 : vector<1x5xf32> to vector<8x5xf32>
    %440 = arith.addf %437, %439 : vector<8x5xf32>
    %441 = vector.extract_strided_slice %440 {offsets = [0, 0], sizes = [2, 5], strides = [1, 1]} : vector<8x5xf32> to vector<2x5xf32>
    %c0_136 = arith.constant 0 : index
    %c0_137 = arith.constant 0 : index
    %442 = vector.load %arg18[%c0_136, %c0_137] : memref<2x5xf32, #tpu.memory_space<vmem>>, vector<2x5xf32>
    tpu.vector_store %arg18[%c0_136, %c0_137], %441 {strides = array<i32>} : memref<2x5xf32, #tpu.memory_space<vmem>>, vector<2x5xf32>,
    return
  }
}

</mosaic_0001>

<bundles_post_ra>
// kernel: tpu_custom_call.1
= control target key start
LH: loop header
LB: loop body
LE: loop exit
PB: predicated region body
PF: predicated region fallthrough
CT: control target
= control target key end

     0   :  { %s4569_s0 = inlined_call_operand.hbm [shape: f32[8,8,16], index: 0, kind: input, shape index: {}]   ;;  %s4570_s1 = inlined_call_operand.hbm [shape: f32[16,256], index: 1, kind: input, shape index: {}]   ;;  %s4571_s2 = inlined_call_operand.vmem [shape: f32[64,256], index: 2, kind: input, shape index: {}]   ;;  %s4572_s3 = inlined_call_operand.vmem [shape: f32[1,256], index: 3, kind: input, shape index: {}]   ;;  %s4573_s4 = inlined_call_operand.hbm [shape: f32[32,128], index: 4, kind: input, shape index: {}]   ;;  %s4574_s5 = inlined_call_operand.hbm [shape: f32[32,128], index: 5, kind: input, shape index: {}]   ;;  %s4575_s6 = inlined_call_operand.hbm [shape: f32[32,128], index: 6, kind: input, shape index: {}]   ;;  %s4576_s7 = inlined_call_operand.vmem [shape: f32[1,128], index: 7, kind: input, shape index: {}]   ;;  %s4577_s8 = inlined_call_operand.hbm [shape: f32[32,128], index: 8, kind: input, shape index: {}]   ;;  %s4578_s9 = inlined_call_operand.hbm [shape: f32[32,128], index: 9, kind: input, shape index: {}]   ;;  %s4579_s10 = inlined_call_operand.vmem [shape: f32[1,128], index: 10, kind: input, shape index: {}]   ;;  %s4580_s11 = inlined_call_operand.hbm [shape: f32[32,64], index: 11, kind: input, shape index: {}]   ;;  %s4581_s12 = inlined_call_operand.hbm [shape: f32[32,64], index: 12, kind: input, shape index: {}]   ;;  %s4582_s13 = inlined_call_operand.vmem [shape: f32[1,64], index: 13, kind: input, shape index: {}]   ;;  %s4583_s14 = inlined_call_operand.hbm [shape: f32[64,128], index: 14, kind: input, shape index: {}]   ;;  %s4584_s15 = inlined_call_operand.vmem [shape: f32[1,128], index: 15, kind: input, shape index: {}]   ;;  %s4585_s16 = inlined_call_operand.vmem [shape: f32[128,5], index: 16, kind: input, shape index: {}]   ;;  %s4586_s17 = inlined_call_operand.vmem [shape: f32[1,5], index: 17, kind: input, shape index: {}]   ;;  %s4587_s18 = inlined_call_operand.hbm [shape: f32[2,5], index: 18, kind: output, shape index: {}]  }
   0x1   :  { %4589 = sst [smem:[#allocation29_spill]] %s4569_s0 }
   0x2   :  { %4590 = sst [smem:[#allocation30_spill]] %s4570_s1 }
   0x3   :  { %4591 = sst [smem:[#allocation31_spill]] %s4571_s2 }
   0x4   :  { %23 = vsyncpa [#allocation5], 0 }
   0x5   :  { %24 = vsyncpa [#allocation8], 0 }
   0x6   :  { %25 = vsyncpa [#allocation11], 0 }
   0x7   :  { %26 = vsyncpa [#allocation14], 0 }
   0x8   :  { %27 = vsyncpa [#allocation17], 0 }
   0x9   :  { %28 = vsyncpa [#allocation20], 0 }
   0xa   :  { %29 = vsyncpa [#allocation6], 0  ;;  %s3725_s27 = smov [#allocation7]  }
   0xb   :  { %s47_s28 = sshll.u32 %s3725_s27, 4  ;;  %s48_s28 = int_to_ptr.vmem [resolvable:$true] %s47_s28 }
   0xc   :  { %s3499_s29 = scalar_lea.vmem %s48_s28, 512  ;;  %p3504_p1 = scmp.lt.s32.totalorder %s48_s28, %s48_s28 }
   0xd   :  { %p3500_p0 = scmp.ne.s32.totalorder %s48_s28, %s3499_s29  ;;  %p3505_p2 = scmp.lt.s32.totalorder %s3499_s29, %s3499_s29 }
   0xf   :  { %p3506_p3 = por %p3505_p2, %p3504_p1 }
  0x11   :  { %p3507_p4 = pnand %p3506_p3, %p3500_p0 }
  0x13   :  { %3510 = shalt.err (!%p3507_p4)
}
  0x14   :  { %s3726_s30 = smov 256   ;;  %s3727_s0 = smov 16  }
  0x15   :  { %s4592_s20 = sld [smem:[#allocation30_spill]]  ;;  %s3728_s21 = smov [#allocation10]  }
  0x16   :  { %s75_s22 = sshll.u32 %s3728_s21, 4  ;;  %s3729_s2 = smov [#allocation13]   ;;  %s76_s22 = int_to_ptr.vmem [resolvable:$true] %s75_s22 }
  0x17   :  { %s101_s23 = sshll.u32 %s3729_s2, 4  ;;  %s3519_s24 = scalar_lea.vmem %s76_s22, 512  ;;  %s102_s23 = int_to_ptr.vmem [resolvable:$true] %s101_s23 }
  0x18   :  { %p3520_p5 = scmp.ne.s32.totalorder %s76_s22, %s3519_s24  ;;  %p3524_p6 = scmp.lt.s32.totalorder %s76_s22, %s76_s22 }
  0x19   :  { %p3525_p7 = scmp.lt.s32.totalorder %s3519_s24, %s3519_s24 }
  0x1b   :  { %53 = dma.hbm_to_vmem [thread:$0]  %s4592_s20, 512, %s48_s28, [#allocation8], %s3726_s30, %s3726_s30, %s3727_s0  }
  0x1c   :  { %p3526_p8 = por %p3525_p7, %p3524_p6 }
  0x1e   :  { %p3527_p9 = pnand %p3526_p8, %p3520_p5 }
  0x20   :  { %3530 = shalt.err (!%p3527_p9)
}
  0x21   :  { %s3730_s25 = smov 128   ;;  %s3731_s26 = smov 8  }
  0x22   :  { %81 = dma.hbm_to_vmem [thread:$0]  %s4574_s5, 512, %s76_s22, [#allocation11], %s3730_s25, %s3730_s25, %s3731_s26  }
  0x23   :  { %s3539_s28 = scalar_lea.vmem %s102_s23, 512  ;;  %p3544_p11 = scmp.lt.s32.totalorder %s102_s23, %s102_s23 }
  0x24   :  { %p3540_p10 = scmp.ne.s32.totalorder %s102_s23, %s3539_s28  ;;  %p3545_p12 = scmp.lt.s32.totalorder %s3539_s28, %s3539_s28 }
  0x26   :  { %p3546_p13 = por %p3545_p12, %p3544_p11 }
  0x28   :  { %p3547_p0 = pnand %p3546_p13, %p3540_p10 }
  0x2a   :  { %3550 = shalt.err (!%p3547_p0)
}
  0x2b   :  { %107 = dma.hbm_to_vmem [thread:$0]  %s4577_s8, 512, %s102_s23, [#allocation14], %s3730_s25, %s3730_s25, %s3731_s26  }
  0x2c   :  { %s3732_s19 = smov [#allocation16]   ;;  %s3733_s20 = smov [#allocation4]  }
  0x2d   :  { %s127_s1 = sshll.u32 %s3732_s19, 4  ;;  %s35_s5 = sshll.u32 %s3733_s20, 4  ;;  %s128_s1 = int_to_ptr.vmem [resolvable:$true] %s127_s1  ;;  %s36_s5 = int_to_ptr.vmem [resolvable:$true] %s35_s5 }
  0x2e   :  { %s3559_s21 = scalar_lea.vmem %s128_s1, 512  ;;  %p3564_p2 = scmp.lt.s32.totalorder %s128_s1, %s128_s1 }
  0x2f   :  { %p3560_p1 = scmp.ne.s32.totalorder %s128_s1, %s3559_s21  ;;  %p3565_p3 = scmp.lt.s32.totalorder %s3559_s21, %s3559_s21 }
  0x31   :  { %p3566_p4 = por %p3565_p3, %p3564_p2 }
  0x33   :  { %p3567_p5 = pnand %p3566_p4, %p3560_p1 }
  0x35   :  { %3570 = shalt.err (!%p3567_p5)
}
  0x36   :  { %133 = dma.hbm_to_vmem [thread:$0]  %s4580_s11, 512, %s128_s1, [#allocation17], %s3730_s25, %s3730_s25, %s3731_s26  }
  0x37   :  { %s3579_s8 = scalar_lea.vmem %s36_s5, 1024  ;;  %p3584_p7 = scmp.lt.s32.totalorder %s36_s5, %s36_s5 }
  0x38   :  { %p3580_p6 = scmp.ne.s32.totalorder %s36_s5, %s3579_s8  ;;  %p3585_p8 = scmp.lt.s32.totalorder %s3579_s8, %s3579_s8 }
  0x3a   :  { %p3586_p9 = por %p3585_p8, %p3584_p7 }
  0x3c   :  { %p3587_p10 = pnand %p3586_p9, %p3580_p6 }
  0x3e   :  { %3590 = shalt.err (!%p3587_p10)
}
  0x3f   :  { %s4593_s27 = sld [smem:[#allocation29_spill]]  ;;  %s3734_s29 = smov [#allocation9]  }
  0x40   :  { %s63_s28 = sshll.u32 %s3734_s29, 4  ;;  %s3735_s30 = smov [#allocation12]   ;;  %s64_s28 = int_to_ptr.vmem [resolvable:$true] %s63_s28 }
  0x41   :  { %s87_s11 = sshll.u32 %s3735_s30, 4  ;;  %s3599_s0 = scalar_lea.vmem %s64_s28, 512  ;;  %s88_s11 = int_to_ptr.vmem [resolvable:$true] %s87_s11 }
  0x42   :  { %p3600_p11 = scmp.ne.s32.totalorder %s64_s28, %s3599_s0  ;;  %p3604_p12 = scmp.lt.s32.totalorder %s64_s28, %s64_s28 }
  0x43   :  { %p3605_p13 = scmp.lt.s32.totalorder %s3599_s0, %s3599_s0 }
  0x45   :  { %41 = dma.hbm_to_vmem [thread:$0]  %s4593_s27, 1024, %s36_s5, [#allocation5], %s3730_s25, %s3730_s25, %s3731_s26  }
  0x46   :  { %p3606_p0 = por %p3605_p13, %p3604_p12 }
  0x48   :  { %p3607_p1 = pnand %p3606_p0, %p3600_p11 }
  0x4a   :  { %3610 = shalt.err (!%p3607_p1)
}
  0x4b   :  { %69 = dma.hbm_to_vmem [thread:$0]  %s4573_s4, 512, %s64_s28, [#allocation8], %s3730_s25, %s3730_s25, %s3731_s26  }
  0x4c   :  { %s3619_s20 = scalar_lea.vmem %s88_s11, 512  ;;  %p3624_p3 = scmp.lt.s32.totalorder %s88_s11, %s88_s11 }
  0x4d   :  { %p3620_p2 = scmp.ne.s32.totalorder %s88_s11, %s3619_s20  ;;  %p3625_p4 = scmp.lt.s32.totalorder %s3619_s20, %s3619_s20 }
  0x4f   :  { %p3626_p5 = por %p3625_p4, %p3624_p3 }
  0x51   :  { %p3627_p6 = pnand %p3626_p5, %p3620_p2 }
  0x53   :  { %3630 = shalt.err (!%p3627_p6)
}
  0x54   :  { %93 = dma.hbm_to_vmem [thread:$0]  %s4575_s6, 512, %s88_s11, [#allocation11], %s3730_s25, %s3730_s25, %s3731_s26  }
  0x55   :  { %s3736_s22 = smov [#allocation15]   ;;  %s3737_s8 = smov [#allocation18]  }
  0x56   :  { %s113_s2 = sshll.u32 %s3736_s22, 4  ;;  %s139_s4 = sshll.u32 %s3737_s8, 4  ;;  %s114_s2 = int_to_ptr.vmem [resolvable:$true] %s113_s2  ;;  %s140_s4 = int_to_ptr.vmem [resolvable:$true] %s139_s4 }
  0x57   :  { %s3639_s23 = scalar_lea.vmem %s114_s2, 512  ;;  %p3644_p8 = scmp.lt.s32.totalorder %s114_s2, %s114_s2 }
  0x58   :  { %p3640_p7 = scmp.ne.s32.totalorder %s114_s2, %s3639_s23  ;;  %p3645_p9 = scmp.lt.s32.totalorder %s3639_s23, %s3639_s23 }
  0x5a   :  { %p3646_p10 = por %p3645_p9, %p3644_p8 }
  0x5c   :  { %p3647_p11 = pnand %p3646_p10, %p3640_p7 }
  0x5e   :  { %3650 = shalt.err (!%p3647_p11)
}
  0x5f   :  { %119 = dma.hbm_to_vmem [thread:$0]  %s4578_s9, 512, %s114_s2, [#allocation14], %s3730_s25, %s3730_s25, %s3731_s26  }
  0x60   :  { %s3659_s6 = scalar_lea.vmem %s140_s4, 512  ;;  %p3664_p13 = scmp.lt.s32.totalorder %s140_s4, %s140_s4 }
  0x61   :  { %p3660_p12 = scmp.ne.s32.totalorder %s140_s4, %s3659_s6  ;;  %p3665_p0 = scmp.lt.s32.totalorder %s3659_s6, %s3659_s6 }
  0x63   :  { %p3666_p1 = por %p3665_p0, %p3664_p13 }
  0x65   :  { %p3667_p2 = pnand %p3666_p1, %p3660_p12 }
  0x67   :  { %3670 = shalt.err (!%p3667_p2)
}
  0x68   :  { %145 = dma.hbm_to_vmem [thread:$0]  %s4581_s12, 512, %s140_s4, [#allocation17], %s3730_s25, %s3730_s25, %s3731_s26  }
  0x69   :  { %s3738_s30 = smov [#allocation19]  }
  0x6a   :  { %s153_s11 = sshll.u32 %s3738_s30, 4  ;;  %s154_s11 = int_to_ptr.vmem [resolvable:$true] %s153_s11 }
  0x6b   :  { %s3679_s0 = scalar_lea.vmem %s154_s11, 1024  ;;  %p3684_p4 = scmp.lt.s32.totalorder %s154_s11, %s154_s11 }
  0x6c   :  { %p3680_p3 = scmp.ne.s32.totalorder %s154_s11, %s3679_s0  ;;  %p3685_p5 = scmp.lt.s32.totalorder %s3679_s0, %s3679_s0 }
  0x6e   :  { %p3686_p6 = por %p3685_p5, %p3684_p4 }
  0x70   :  { %p3687_p7 = pnand %p3686_p6, %p3680_p3 }
  0x72   :  { %3690 = shalt.err (!%p3687_p7)
}
  0x73   :  { %159 = dma.hbm_to_vmem [thread:$0]  %s4583_s14, 1024, %s154_s11, [#allocation20], %s3730_s25, %s3730_s25, %s3731_s26  }
  0x74   :  { %3711 = dma.done.wait [#allocation5], 1024  }
  0x75   :  { %3712 = vsyncadd [#allocation5], 4294966272 }
  0x76   :  { %3713 = dma.done.wait [#allocation8], 1024  }
  0x77   :  { %3714 = vsyncadd [#allocation8], 4294966272 }
  0x78   :  { %3715 = dma.done.wait [#allocation11], 1024  }
  0x79   :  { %3716 = vsyncadd [#allocation11], 4294966272 }
  0x7a   :  { %3717 = dma.done.wait [#allocation14], 1024  }
  0x7b   :  { %3718 = vsyncadd [#allocation14], 4294966272 }
  0x7c   :  { %3719 = dma.done.wait [#allocation17], 1024  }
  0x7d   :  { %3720 = vsyncadd [#allocation17], 4294966272 }
  0x7e   :  { %3721 = dma.done.wait [#allocation20], 1024  }
  0x7f   :  { %3722 = vsyncadd [#allocation20], 4294966272  ;;  %v3739_v0 = vmov 0.0   ;;  %v207_v1 = vld [vmem:[#allocation7 + $0x18] sm:$0xff]  ;;  %v206_v2 = vld [vmem:[#allocation7 + $0x10] sm:$0xff]  ;;  %vm220_vm0 = vcmask 130048   ;;  %v210_v26 = vlaneseq }
  0x80   :  { %333 = vmatprep.mubr.f32.mxu1 %v3739_v0  ;;  %309 = vmatprep.mubr.f32.mxu0 %v3739_v0  ;;  %v205_v3 = vld [vmem:[#allocation7 + $0x8] sm:$0xff]  ;;  %v204_v4 = vld [vmem:[#allocation7] sm:$0xff]  ;;  %s4594_s25 = sld [smem:[#allocation31_spill]]  ;;  %v202_v16 = vld [vmem:[#allocation4 + $0x30] sm:$0xff]  ;;  %vm477_vm1 = vcmask 261120   ;;  %vm374_vm2 = vcmask 523264  }
  0x81   :  { %3299 = vmatprep.subr.mxu1 %v207_v1  ;;  %273 = vmatprep.subr.mxu0 %v207_v1  ;;  %v200_v5 = vld [vmem:[#allocation4 + $0x20] sm:$0xff]  ;;  %v201_v10 = vld [vmem:[#allocation4 + $0x28] sm:$0xff]  ;;  %v203_v21 = vld [vmem:[#allocation4 + $0x38] sm:$0xff]  ;;  %v211_v29 = vshrl.u32 %v210_v26, 7  ;;  %s3741_s23 = smov 32   ;;  %vm3742_vm3 = vmmov 0  }
  0x82   :  { %3301 = vmatpush1.msra.mxu1 %v206_v2  ;;  %274 = vmatpush1.msra.mxu0 %v206_v2  ;;  %v196_v13 = vld [vmem:[#allocation4] sm:$0xff]  ;;  %v197_v55 = vld [vmem:[#allocation4 + $0x8] sm:$0xff]  ;;  %s3744_s20 = smov [#allocation21]   ;;  %vm2868_vm4 = vcmask 33792  }
  0x83   :  { %3300 = vmatprep.subr.mxu1 %v205_v3  ;;  %275 = vmatprep.subr.mxu0 %v205_v3  ;;  %v212_v32 = vsub.s32 0, %v211_v29  ;;  %v208_v33 = vld [vmem:[%s4572_s3] sm:$0x3]  ;;  %v216_v44 = vsub.s32 1, %v211_v29  ;;  %s3740_s3 = smov 64   ;;  %s2876_s5 = sshll.u32 %s3744_s20, 4  ;;  %s2877_s5 = int_to_ptr.vmem [resolvable:$true] %s2876_s5 }
  0x84   :  { %3302 = vmatpush1.msra.mxu1 %v204_v4  ;;  %276 = vmatpush1.msra.mxu0 %v204_v4  ;;  %p3696_p9 = scmp.lt.s32.totalorder %s2877_s5, %s2877_s5 }
  0x85   :  { %2894 = vmatmul.mubr.msk.f32.vlgmr.msra.gmra.mxu1 %vm220_vm0, %v200_v5  ;;  %2890 = vmatmul.mubr.msk.f32.vlgmr.msra.gmra.mxu0 %vm220_vm0, %v196_v13  ;;  %v4056_v36 = vrot.slane %v208_v33, %v212_v32  ;;  %v4063_v46 = vrot.slane %v208_v33, %v216_v44 }
  0x86   :  { %v3902_v6 = vld [vmem:[%s4594_s25 + $0x78] sm:$0xff]  ;;  %v3907_v7 = vld [vmem:[%s4594_s25 + $0x70] sm:$0xff]  ;;  %v3912_v8 = vld [vmem:[%s4594_s25 + $0x68] sm:$0xff]  ;;  %339 = vmatprep.mubr.f32.mxu1 %v3739_v0  ;;  %315 = vmatprep.mubr.f32.mxu0 %v3739_v0 }
  0x87   :  { %394 = vmatprep.subr.mxu1 %v3902_v6  ;;  %v3919_v9 = vld [vmem:[%s4594_s25 + $0x60] sm:$0xff]  ;;  %v3926_v11 = vld [vmem:[%s4594_s25 + $0x58] sm:$0xff]  ;;  %v3932_v12 = vld [vmem:[%s4594_s25 + $0x50] sm:$0xff]  ;;  %610 = vmatprep.subr.mxu0 %v3902_v6 }
  0x88   :  { %395 = vmatpush1.msra.mxu1 %v3907_v7  ;;  %v3939_v14 = vld [vmem:[%s4594_s25 + $0x48] sm:$0xff]  ;;  %v3947_v15 = vld [vmem:[%s4594_s25 + $0x40] sm:$0xff]  ;;  %v3954_v17 = vld [vmem:[%s4594_s25 + $0x38] sm:$0xff]  ;;  %611 = vmatpush1.msra.mxu0 %v3907_v7 }
  0x89   :  { %396 = vmatprep.subr.mxu1 %v3912_v8  ;;  %2895 = vmatmul.mubr.msk.f32.gmra.mxu1 %vm220_vm0, %v201_v10  ;;  %v3960_v18 = vld [vmem:[%s4594_s25 + $0x30] sm:$0xff]  ;;  %v3967_v19 = vld [vmem:[%s4594_s25 + $0x28] sm:$0xff]  ;;  %v3975_v20 = vld [vmem:[%s4594_s25 + $0x20] sm:$0xff] }
  0x8a   :  { %397 = vmatpush1.msra.mxu1 %v3919_v9  ;;  %345 = vmatprep.mubr.f32.mxu1 %v3739_v0  ;;  %v3982_v22 = vld [vmem:[%s4594_s25 + $0x18] sm:$0xff]  ;;  %v3988_v23 = vld [vmem:[%s4594_s25 + $0x10] sm:$0xff]  ;;  %v3995_v24 = vld [vmem:[%s4594_s25 + $0x8] sm:$0xff] }
  0x8b   :  { %398 = vmatprep.subr.mxu1 %v3926_v11  ;;  %612 = vmatprep.subr.mxu0 %v3912_v8  ;;  %v4003_v25 = vld [vmem:[%s4594_s25] sm:$0xff] }
  0x8c   :  { %399 = vmatpush1.msra.mxu1 %v3932_v12  ;;  %613 = vmatpush1.msra.mxu0 %v3919_v9 }
  0x8d   :  { %400 = vmatprep.subr.mxu1 %v3939_v14  ;;  %2896 = vmatmul.mubr.msk.f32.gmra.mxu1 %vm220_vm0, %v202_v16 }
  0x8e   :  { %401 = vmatpush1.msra.mxu1 %v3947_v15  ;;  %351 = vmatprep.mubr.f32.mxu1 %v3739_v0 }
  0x8f   :  { %402 = vmatprep.subr.mxu1 %v3954_v17  ;;  %614 = vmatprep.subr.mxu0 %v3926_v11 }
  0x90   :  { %403 = vmatpush1.msra.mxu1 %v3960_v18  ;;  %615 = vmatpush1.msra.mxu0 %v3932_v12 }
  0x91   :  { %404 = vmatprep.subr.mxu1 %v3967_v19  ;;  %2897 = vmatmul.mubr.msk.f32.gmra.mxu1 %vm220_vm0, %v203_v21 }
  0x92   :  { %405 = vmatpush1.msra.mxu1 %v3975_v20  ;;  %442 = vmatprep.mubr.f32.mxu1 %v3739_v0 }
  0x93   :  { %406 = vmatprep.subr.mxu1 %v3982_v22  ;;  %616 = vmatprep.subr.mxu0 %v3939_v14 }
  0x94   :  { %407 = vmatpush1.msra.mxu1 %v3988_v23  ;;  %617 = vmatpush1.msra.mxu0 %v3947_v15 }
  0x95   :  { %408 = vmatprep.subr.mxu1 %v3995_v24  ;;  %618 = vmatprep.subr.mxu0 %v3954_v17 }
  0x96   :  { %409 = vmatpush1.msra.mxu1 %v4003_v25  ;;  %619 = vmatpush1.msra.mxu0 %v3960_v18 }
  0x97   :  { %443 = vmatmul.mubr.f32.vlgmr.msra.gmra.mxu1 %v3739_v0  ;;  %502 = vmatprep.subr.mxu1 %v3902_v6 }
  0x98   :  { %503 = vmatpush1.msra.mxu1 %v3907_v7  ;;  %550 = vmatprep.mubr.f32.mxu1 %v3739_v0 }
  0x99   :  { %504 = vmatprep.subr.mxu1 %v3912_v8  ;;  %620 = vmatprep.subr.mxu0 %v3967_v19 }
  0x9a   :  { %505 = vmatpush1.msra.mxu1 %v3919_v9  ;;  %621 = vmatpush1.msra.mxu0 %v3975_v20 }
  0x9b   :  { %506 = vmatprep.subr.mxu1 %v3926_v11  ;;  %622 = vmatprep.subr.mxu0 %v3982_v22 }
  0x9c   :  { %507 = vmatpush1.msra.mxu1 %v3932_v12  ;;  %623 = vmatpush1.msra.mxu0 %v3988_v23 }
  0x9d   :  { %508 = vmatprep.subr.mxu1 %v3939_v14  ;;  %624 = vmatprep.subr.mxu0 %v3995_v24 }
  0x9e   :  { %509 = vmatpush1.msra.mxu1 %v3947_v15  ;;  %625 = vmatpush1.msra.mxu0 %v4003_v25 }
  0x9f   :  { %510 = vmatprep.subr.mxu1 %v3954_v17  ;;  %826 = vmatprep.subr.mxu0 %v3902_v6 }
  0xa0   :  { %511 = vmatpush1.msra.mxu1 %v3960_v18  ;;  %2891 = vmatmul.mubr.msk.f32.gmra.mxu0 %vm220_vm0, %v197_v55 }
  0xa1   :  { %512 = vmatprep.subr.mxu1 %v3967_v19  ;;  %321 = vmatprep.mubr.f32.mxu0 %v3739_v0 }
  0xa2   :  { %513 = vmatpush1.msra.mxu1 %v3975_v20 }
  0xa3   :  { %514 = vmatprep.subr.mxu1 %v3982_v22 }
  0xa4   :  { %515 = vmatpush1.msra.mxu1 %v3988_v23 }
  0xa5   :  { %516 = vmatprep.subr.mxu1 %v3995_v24 }
  0xa6   :  { %517 = vmatpush1.msra.mxu1 %v4003_v25 }
  0xa7   :  { %718 = vmatprep.subr.mxu1 %v3902_v6 }
 0x145   :  { %v4041_v27 = vpop.f32.mrf.mxu1  ;;  %v311_v38 = vpop.f32.mrf.mxu0 }
 0x146   :  { %v312_v39 = vadd.f32 %v311_v38, %v4056_v36 }
 0x147   :  { %v4043_v28 = vpop.f32.mrf.mxu1  ;;  %v313_v45 = vpop.f32.mrf.mxu0 }
 0x148   :  { %v314_v48 = vadd.f32 %v313_v45, %v4063_v46 }
 0x149   :  { %v4045_v30 = vpop.f32.mrf.mxu1 }
 0x14b   :  { %v4047_v31 = vpop.f32.mrf.mxu1 }
 0x14d   :  { %v4052_v34 = vpop.f32.mrf.mxu1 }
 0x14f   :  { %v4054_v35 = vpop.f32.mrf.mxu1 }
 0x151   :  { %v4058_v37 = vpop.f32.mrf.mxu1 }
 0x153   :  { %v4061_v40 = vpop.f32.mrf.mxu1 }
 0x157   :  { %v444_v41 = vpop.f32.mrf.mxu1 }
 0x158   :  { %v449_v42 = vadd.f32 %v444_v41, %v312_v39 }
 0x159   :  { %v446_v47 = vpop.f32.mrf.mxu1 }
 0x15a   :  { %v2898_v43 = vmul.f32 -1.442695, %v449_v42  ;;  %v450_v49 = vadd.f32 %v446_v47, %v314_v48  ;;  %v198_v42 = vld [vmem:[#allocation4 + $0x10] sm:$0xff] }
 0x15b   :  { %2892 = vmatmul.mubr.msk.f32.gmra.mxu0 %vm220_vm0, %v198_v42 }
 0x15c   :  { %3323 = vpow2.f32 %v2898_v43  ;;  %v2899_v56 = vmul.f32 -1.442695, %v450_v49  ;;  %327 = vmatprep.mubr.f32.mxu0 %v3739_v0  ;;  %v199_v43 = vld [vmem:[#allocation4 + $0x18] sm:$0xff] }
 0x15d   :  { %3325 = vtanh.f32 %v450_v49 }
 0x15f   :  { %2893 = vmatmul.mubr.msk.f32.gmra.mxu0 %vm220_vm0, %v199_v43 }
 0x160   :  { %v317_v3 = vpop.f32.mrf.mxu0  ;;  %658 = vmatprep.mubr.f32.mxu0 %v3739_v0 }
 0x161   :  { %v318_v4 = vadd.f32 %v317_v3, %v4056_v36 }
 0x162   :  { %v319_v16 = vpop.f32.mrf.mxu0 }
 0x163   :  { %v320_v26 = vadd.f32 %v319_v16, %v4063_v46 }
 0x169   :  { %v3324_v50 = vpop.eup %3323 }
 0x16a   :  { %v457_v51 = vadd.f32 1.0, %v3324_v50  ;;  %v3326_v52 = vpop.eup %3325 }
 0x16c   :  { %3327 = vrcp.f32 %v457_v51 }
 0x16d   :  { %3329 = vpow2.f32 %v2899_v56 }
 0x179   :  { %v3328_v53 = vpop.eup %3327 }
 0x17a   :  { %v465_v54 = vmul.f32 %v3328_v53, %v3326_v52  ;;  %v3330_v57 = vpop.eup %3329  ;;  %v464_v59 = vmul.f32 0.0, %v3328_v53 }
 0x17b   :  { %v458_v58 = vadd.f32 1.0, %v3330_v57 }
 0x17c   :  { %467 = vrot.lane.b32.xlu0 %v465_v54, %s3740_s3 }
 0x17d   :  { %3331 = vrcp.f32 %v458_v58 }
 0x18a   :  { %v3332_v62 = vpop.eup %3331 }
 0x1ee   :  { %v468_v60 = vpop.permute.xlu0 %467 }
 0x1ef   :  { %v470_v61 = vadd.f32 %v468_v60, %v464_v59 }
 0x1f1   :  { %3333 = vtanh.f32 %v470_v61 }
 0x1fe   :  { %v3334_v63 = vpop.eup %3333 }
 0x1ff   :  { %v4069_v1 = vmul.f32 %v3334_v63, %v3332_v62 }
 0x201   :  { %474 = vrot.lane.b32.xlu0 %v4069_v1, %s3740_s3 }
 0x21b   :  { %v323_v55 = vpop.f32.mrf.mxu0 }
 0x21c   :  { %v324_v59 = vadd.f32 %v323_v55, %v4056_v36 }
 0x21d   :  { %v325_v56 = vpop.f32.mrf.mxu0 }
 0x21f   :  { %v329_v57 = vpop.f32.mrf.mxu0 }
 0x221   :  { %v331_v58 = vpop.f32.mrf.mxu0 }
 0x273   :  { %v475_v2 = vpop.permute.xlu0 %474 }
 0x274   :  { %478 = vst.msk [vmem:[#allocation2] sm:$0xff] %vm477_vm1, %v475_v2  ;;  %2900 = vmatmul.mubr.msk.f32.vlgmr.msra.gmra.mxu1 %vm374_vm2, %v475_v2  ;;  %v326_v2 = vadd.f32 %v325_v56, %v4063_v46 }
 0x275   :  { %719 = vmatpush1.msra.mxu1 %v3907_v7  ;;  %766 = vmatprep.mubr.f32.mxu1 %v3739_v0 }
 0x276   :  { %720 = vmatprep.subr.mxu1 %v3912_v8 }
 0x277   :  { %721 = vmatpush1.msra.mxu1 %v3919_v9 }
 0x278   :  { %722 = vmatprep.subr.mxu1 %v3926_v11 }
 0x279   :  { %723 = vmatpush1.msra.mxu1 %v3932_v12 }
 0x27a   :  { %724 = vmatprep.subr.mxu1 %v3939_v14 }
 0x27b   :  { %725 = vmatpush1.msra.mxu1 %v3947_v15 }
 0x27c   :  { %726 = vmatprep.subr.mxu1 %v3954_v17 }
 0x27d   :  { %727 = vmatpush1.msra.mxu1 %v3960_v18 }
 0x27e   :  { %728 = vmatprep.subr.mxu1 %v3967_v19 }
 0x27f   :  { %729 = vmatpush1.msra.mxu1 %v3975_v20 }
 0x280   :  { %730 = vmatprep.subr.mxu1 %v3982_v22 }
 0x281   :  { %731 = vmatpush1.msra.mxu1 %v3988_v23 }
 0x282   :  { %732 = vmatprep.subr.mxu1 %v3995_v24 }
 0x283   :  { %733 = vmatpush1.msra.mxu1 %v4003_v25 }
 0x284   :  { %934 = vmatprep.subr.mxu1 %v3902_v6 }
 0x334   :  { %v552_v5 = vpop.f32.mrf.mxu1 }
 0x335   :  { %v557_v10 = vadd.f32 %v552_v5, %v318_v4 }
 0x336   :  { %v554_v21 = vpop.f32.mrf.mxu1 }
 0x337   :  { %v2901_v13 = vmul.f32 -1.442695, %v557_v10  ;;  %v558_v29 = vadd.f32 %v554_v21, %v320_v26 }
 0x339   :  { %3335 = vpow2.f32 %v2901_v13  ;;  %v2902_v44 = vmul.f32 -1.442695, %v558_v29 }
 0x33a   :  { %3337 = vtanh.f32 %v558_v29 }
 0x346   :  { %v3336_v32 = vpop.eup %3335 }
 0x347   :  { %v565_v33 = vadd.f32 1.0, %v3336_v32  ;;  %v3338_v38 = vpop.eup %3337 }
 0x349   :  { %3339 = vrcp.f32 %v565_v33 }
 0x34a   :  { %3341 = vpow2.f32 %v2902_v44  ;;  %v330_v44 = vadd.f32 %v329_v57, %v4056_v36 }
 0x356   :  { %v3340_v39 = vpop.eup %3339 }
 0x357   :  { %v573_v41 = vmul.f32 %v3340_v39, %v3338_v38  ;;  %v3342_v45 = vpop.eup %3341  ;;  %v572_v48 = vmul.f32 %v3340_v39, %v470_v61 }
 0x358   :  { %v566_v47 = vadd.f32 1.0, %v3342_v45 }
 0x359   :  { %575 = vrot.lane.b32.xlu1 %v573_v41, %s3740_s3 }
 0x35a   :  { %3343 = vrcp.f32 %v566_v47 }
 0x367   :  { %v3344_v51 = vpop.eup %3343 }
 0x3cb   :  { %v576_v49 = vpop.permute.xlu1 %575 }
 0x3cc   :  { %v578_v50 = vadd.f32 %v576_v49, %v572_v48 }
 0x3ce   :  { %3345 = vtanh.f32 %v578_v50 }
 0x3db   :  { %v3346_v52 = vpop.eup %3345 }
 0x3dc   :  { %v4099_v53 = vmul.f32 %v3346_v52, %v3344_v51 }
 0x3de   :  { %582 = vrot.lane.b32.xlu1 %v4099_v53, %s3740_s3 }
 0x450   :  { %v583_v54 = vpop.permute.xlu1 %582 }
 0x451   :  { %586 = vst.msk [vmem:[#allocation2 + $0x8] sm:$0xff] %vm477_vm1, %v583_v54  ;;  %2903 = vmatmul.mubr.msk.f32.vlgmr.msra.gmra.mxu0 %vm374_vm2, %v583_v54 }
 0x452   :  { %827 = vmatpush1.msra.mxu0 %v3907_v7  ;;  %874 = vmatprep.mubr.f32.mxu0 %v3739_v0 }
 0x453   :  { %828 = vmatprep.subr.mxu0 %v3912_v8 }
 0x454   :  { %829 = vmatpush1.msra.mxu0 %v3919_v9 }
 0x455   :  { %830 = vmatprep.subr.mxu0 %v3926_v11 }
 0x456   :  { %831 = vmatpush1.msra.mxu0 %v3932_v12 }
 0x457   :  { %832 = vmatprep.subr.mxu0 %v3939_v14 }
 0x458   :  { %833 = vmatpush1.msra.mxu0 %v3947_v15 }
 0x459   :  { %834 = vmatprep.subr.mxu0 %v3954_v17 }
 0x45a   :  { %835 = vmatpush1.msra.mxu0 %v3960_v18 }
 0x45b   :  { %836 = vmatprep.subr.mxu0 %v3967_v19 }
 0x45c   :  { %837 = vmatpush1.msra.mxu0 %v3975_v20 }
 0x45d   :  { %838 = vmatprep.subr.mxu0 %v3982_v22 }
 0x45e   :  { %839 = vmatpush1.msra.mxu0 %v3988_v23 }
 0x45f   :  { %840 = vmatprep.subr.mxu0 %v3995_v24 }
 0x460   :  { %841 = vmatpush1.msra.mxu0 %v4003_v25 }
 0x461   :  { %1042 = vmatprep.subr.mxu0 %v3902_v6 }
 0x511   :  { %v660_v60 = vpop.f32.mrf.mxu0 }
 0x512   :  { %v665_v61 = vadd.f32 %v660_v60, %v324_v59 }
 0x513   :  { %v662_v63 = vpop.f32.mrf.mxu0 }
 0x514   :  { %v2904_v62 = vmul.f32 -1.442695, %v665_v61  ;;  %v666_v3 = vadd.f32 %v662_v63, %v326_v2 }
 0x516   :  { %3347 = vpow2.f32 %v2904_v62  ;;  %v2905_v21 = vmul.f32 -1.442695, %v666_v3 }
 0x517   :  { %3349 = vtanh.f32 %v666_v3 }
 0x523   :  { %v3348_v4 = vpop.eup %3347 }
 0x524   :  { %v673_v5 = vadd.f32 1.0, %v3348_v4  ;;  %v3350_v10 = vpop.eup %3349 }
 0x526   :  { %3351 = vrcp.f32 %v673_v5  ;;  %v336_v5 = vadd.f32 %v4041_v27, %v4056_v36 }
 0x527   :  { %3353 = vpow2.f32 %v2905_v21 }
 0x533   :  { %v3352_v13 = vpop.eup %3351 }
 0x534   :  { %v681_v16 = vmul.f32 %v3352_v13, %v3350_v10  ;;  %v3354_v26 = vpop.eup %3353  ;;  %v680_v32 = vmul.f32 %v3352_v13, %v578_v50  ;;  %v332_v50 = vadd.f32 %v331_v58, %v4063_v46 }
 0x535   :  { %v674_v29 = vadd.f32 1.0, %v3354_v26  ;;  %v338_v26 = vadd.f32 %v4043_v28, %v4063_v46 }
 0x536   :  { %683 = vrot.lane.b32.xlu0 %v681_v16, %s3740_s3 }
 0x537   :  { %3355 = vrcp.f32 %v674_v29 }
 0x544   :  { %v3356_v39 = vpop.eup %3355 }
 0x5a8   :  { %v684_v33 = vpop.permute.xlu0 %683 }
 0x5a9   :  { %v686_v38 = vadd.f32 %v684_v33, %v680_v32 }
 0x5ab   :  { %3357 = vtanh.f32 %v686_v38 }
 0x5b8   :  { %v3358_v41 = vpop.eup %3357 }
 0x5b9   :  { %v4125_v42 = vmul.f32 %v3358_v41, %v3356_v39 }
 0x5bb   :  { %690 = vrot.lane.b32.xlu1 %v4125_v42, %s3740_s3 }
 0x62d   :  { %v691_v43 = vpop.permute.xlu1 %690 }
 0x62e   :  { %694 = vst.msk [vmem:[#allocation2 + $0x10] sm:$0xff] %vm477_vm1, %v691_v43  ;;  %2906 = vmatmul.mubr.msk.f32.vlgmr.msra.gmra.mxu1 %vm374_vm2, %v691_v43 }
 0x62f   :  { %935 = vmatpush1.msra.mxu1 %v3907_v7  ;;  %982 = vmatprep.mubr.f32.mxu1 %v3739_v0 }
 0x630   :  { %936 = vmatprep.subr.mxu1 %v3912_v8 }
 0x631   :  { %937 = vmatpush1.msra.mxu1 %v3919_v9 }
 0x632   :  { %938 = vmatprep.subr.mxu1 %v3926_v11 }
 0x633   :  { %939 = vmatpush1.msra.mxu1 %v3932_v12 }
 0x634   :  { %940 = vmatprep.subr.mxu1 %v3939_v14 }
 0x635   :  { %941 = vmatpush1.msra.mxu1 %v3947_v15 }
 0x636   :  { %942 = vmatprep.subr.mxu1 %v3954_v17 }
 0x637   :  { %943 = vmatpush1.msra.mxu1 %v3960_v18 }
 0x638   :  { %944 = vmatprep.subr.mxu1 %v3967_v19 }
 0x639   :  { %945 = vmatpush1.msra.mxu1 %v3975_v20 }
 0x63a   :  { %946 = vmatprep.subr.mxu1 %v3982_v22 }
 0x63b   :  { %947 = vmatpush1.msra.mxu1 %v3988_v23 }
 0x63c   :  { %948 = vmatprep.subr.mxu1 %v3995_v24 }
 0x63d   :  { %949 = vmatpush1.msra.mxu1 %v4003_v25 }
 0x63e   :  { %1150 = vmatprep.subr.mxu1 %v3902_v6 }
 0x6ee   :  { %v768_v45 = vpop.f32.mrf.mxu1 }
 0x6ef   :  { %v773_v47 = vadd.f32 %v768_v45, %v330_v44 }
 0x6f0   :  { %v770_v49 = vpop.f32.mrf.mxu1 }
 0x6f1   :  { %v2907_v48 = vmul.f32 -1.442695, %v773_v47  ;;  %v774_v51 = vadd.f32 %v770_v49, %v332_v50 }
 0x6f3   :  { %3359 = vpow2.f32 %v2907_v48  ;;  %v2908_v6 = vmul.f32 -1.442695, %v774_v51 }
 0x6f4   :  { %3361 = vtanh.f32 %v774_v51 }
 0x700   :  { %v3360_v52 = vpop.eup %3359 }
 0x701   :  { %v781_v54 = vadd.f32 1.0, %v3360_v52  ;;  %v3362_v55 = vpop.eup %3361 }
 0x703   :  { %3363 = vrcp.f32 %v781_v54 }
 0x704   :  { %3365 = vpow2.f32 %v2908_v6  ;;  %v348_v6 = vadd.f32 %v4052_v34, %v4056_v36 }
 0x710   :  { %v3364_v56 = vpop.eup %3363 }
 0x711   :  { %v789_v59 = vmul.f32 %v3364_v56, %v3362_v55  ;;  %v3366_v57 = vpop.eup %3365  ;;  %v788_v61 = vmul.f32 %v3364_v56, %v686_v38 }
 0x712   :  { %v782_v60 = vadd.f32 1.0, %v3366_v57 }
 0x713   :  { %791 = vrot.lane.b32.xlu0 %v789_v59, %s3740_s3 }
 0x714   :  { %3367 = vrcp.f32 %v782_v60 }
 0x721   :  { %v3368_v58 = vpop.eup %3367 }
 0x785   :  { %v792_v62 = vpop.permute.xlu0 %791 }
 0x786   :  { %v794_v63 = vadd.f32 %v792_v62, %v788_v61 }
 0x788   :  { %3369 = vtanh.f32 %v794_v63 }
 0x795   :  { %v3370_v2 = vpop.eup %3369 }
 0x796   :  { %v4151_v3 = vmul.f32 %v3370_v2, %v3368_v58 }
 0x798   :  { %798 = vrot.lane.b32.xlu1 %v4151_v3, %s3740_s3 }
 0x80a   :  { %v799_v4 = vpop.permute.xlu1 %798 }
 0x80b   :  { %802 = vst.msk [vmem:[#allocation2 + $0x18] sm:$0xff] %vm477_vm1, %v799_v4  ;;  %2909 = vmatmul.mubr.msk.f32.vlgmr.msra.gmra.mxu0 %vm374_vm2, %v799_v4 }
 0x80c   :  { %1043 = vmatpush1.msra.mxu0 %v3907_v7  ;;  %1090 = vmatprep.mubr.f32.mxu0 %v3739_v0 }
 0x80d   :  { %1044 = vmatprep.subr.mxu0 %v3912_v8 }
 0x80e   :  { %1045 = vmatpush1.msra.mxu0 %v3919_v9 }
 0x80f   :  { %1046 = vmatprep.subr.mxu0 %v3926_v11 }
 0x810   :  { %1047 = vmatpush1.msra.mxu0 %v3932_v12 }
 0x811   :  { %1048 = vmatprep.subr.mxu0 %v3939_v14 }
 0x812   :  { %1049 = vmatpush1.msra.mxu0 %v3947_v15 }
 0x813   :  { %1050 = vmatprep.subr.mxu0 %v3954_v17 }
 0x814   :  { %1051 = vmatpush1.msra.mxu0 %v3960_v18 }
 0x815   :  { %1052 = vmatprep.subr.mxu0 %v3967_v19 }
 0x816   :  { %1053 = vmatpush1.msra.mxu0 %v3975_v20 }
 0x817   :  { %1054 = vmatprep.subr.mxu0 %v3982_v22 }
 0x818   :  { %1055 = vmatpush1.msra.mxu0 %v3988_v23 }
 0x819   :  { %1056 = vmatprep.subr.mxu0 %v3995_v24 }
 0x81a   :  { %1057 = vmatpush1.msra.mxu0 %v4003_v25 }
 0x8cb   :  { %v876_v10 = vpop.f32.mrf.mxu0 }
 0x8cc   :  { %v881_v13 = vadd.f32 %v876_v10, %v336_v5 }
 0x8cd   :  { %v878_v21 = vpop.f32.mrf.mxu0 }
 0x8ce   :  { %v2910_v16 = vmul.f32 -1.442695, %v881_v13  ;;  %v882_v29 = vadd.f32 %v878_v21, %v338_v26 }
 0x8d0   :  { %3371 = vpow2.f32 %v2910_v16  ;;  %v2911_v43 = vmul.f32 -1.442695, %v882_v29  ;;  %v1258_v16 = vld [vmem:[#allocation9 + $0x18] sm:$0xff] }
 0x8d1   :  { %3373 = vtanh.f32 %v882_v29 }
 0x8dd   :  { %v3372_v32 = vpop.eup %3371 }
 0x8de   :  { %v889_v33 = vadd.f32 1.0, %v3372_v32  ;;  %v3374_v38 = vpop.eup %3373 }
 0x8e0   :  { %3375 = vrcp.f32 %v889_v33 }
 0x8e1   :  { %3377 = vpow2.f32 %v2911_v43  ;;  %v1257_v43 = vld [vmem:[#allocation9 + $0x10] sm:$0xff] }
 0x8ed   :  { %v3376_v39 = vpop.eup %3375 }
 0x8ee   :  { %v897_v41 = vmul.f32 %v3376_v39, %v3374_v38  ;;  %v3378_v27 = vpop.eup %3377  ;;  %v896_v45 = vmul.f32 %v3376_v39, %v794_v63  ;;  %v350_v63 = vadd.f32 %v4054_v35, %v4063_v46 }
 0x8ef   :  { %v890_v44 = vadd.f32 1.0, %v3378_v27  ;;  %v1239_v27 = vld [vmem:[#allocation2] sm:$0xff] }
 0x8f0   :  { %899 = vrot.lane.b32.xlu0 %v897_v41, %s3740_s3 }
 0x8f1   :  { %3379 = vrcp.f32 %v890_v44  ;;  %v1256_v44 = vld [vmem:[#allocation9 + $0x8] sm:$0xff] }
 0x8fe   :  { %v3380_v28 = vpop.eup %3379 }
 0x962   :  { %v900_v47 = vpop.permute.xlu0 %899 }
 0x963   :  { %v902_v48 = vadd.f32 %v900_v47, %v896_v45  ;;  %v1255_v45 = vld [vmem:[#allocation9] sm:$0xff]  ;;  %v1240_v47 = vld [vmem:[#allocation2 + $0x8] sm:$0xff] }
 0x965   :  { %3381 = vtanh.f32 %v902_v48 }
 0x972   :  { %v3382_v49 = vpop.eup %3381 }
 0x973   :  { %v4178_v50 = vmul.f32 %v3382_v49, %v3380_v28  ;;  %v1242_v28 = vld [vmem:[#allocation2 + $0x18] sm:$0xff] }
 0x975   :  { %906 = vrot.lane.b32.xlu1 %v4178_v50, %s3740_s3 }
 0x9e7   :  { %v907_v51 = vpop.permute.xlu1 %906 }
 0x9e8   :  { %910 = vst.msk [vmem:[#allocation2 + $0x20] sm:$0xff] %vm477_vm1, %v907_v51  ;;  %2912 = vmatmul.mubr.msk.f32.vlgmr.msra.gmra.mxu1 %vm374_vm2, %v907_v51 }
 0x9e9   :  { %1151 = vmatpush1.msra.mxu1 %v3907_v7  ;;  %1198 = vmatprep.mubr.f32.mxu1 %v3739_v0  ;;  %v342_v7 = vadd.f32 %v4045_v30, %v4056_v36 }
 0x9ea   :  { %1152 = vmatprep.subr.mxu1 %v3912_v8 }
 0x9eb   :  { %1153 = vmatpush1.msra.mxu1 %v3919_v9 }
 0x9ec   :  { %1154 = vmatprep.subr.mxu1 %v3926_v11 }
 0x9ed   :  { %1155 = vmatpush1.msra.mxu1 %v3932_v12 }
 0x9ee   :  { %1156 = vmatprep.subr.mxu1 %v3939_v14  ;;  %v344_v14 = vadd.f32 %v4047_v31, %v4063_v46 }
 0x9ef   :  { %1157 = vmatpush1.msra.mxu1 %v3947_v15  ;;  %v1243_v49 = vld [vmem:[#allocation2 + $0x20] sm:$0xff] }
 0x9f0   :  { %1158 = vmatprep.subr.mxu1 %v3954_v17 }
 0x9f1   :  { %1159 = vmatpush1.msra.mxu1 %v3960_v18 }
 0x9f2   :  { %1160 = vmatprep.subr.mxu1 %v3967_v19 }
 0x9f3   :  { %1161 = vmatpush1.msra.mxu1 %v3975_v20 }
 0x9f4   :  { %1162 = vmatprep.subr.mxu1 %v3982_v22 }
 0x9f5   :  { %1163 = vmatpush1.msra.mxu1 %v3988_v23 }
 0x9f6   :  { %1164 = vmatprep.subr.mxu1 %v3995_v24 }
 0x9f7   :  { %1165 = vmatpush1.msra.mxu1 %v4003_v25 }
 0x9f8   :  { %3093 = vmatprep.subr.mxu1 %v1258_v16 }
 0xaa8   :  { %v984_v8 = vpop.f32.mrf.mxu1 }
 0xaa9   :  { %v989_v9 = vadd.f32 %v984_v8, %v342_v7  ;;  %v354_v8 = vadd.f32 %v4058_v37, %v4056_v36 }
 0xaaa   :  { %v986_v12 = vpop.f32.mrf.mxu1 }
 0xaab   :  { %v2913_v11 = vmul.f32 -1.442695, %v989_v9  ;;  %v990_v15 = vadd.f32 %v986_v12, %v344_v14 }
 0xaad   :  { %3383 = vpow2.f32 %v2913_v11  ;;  %v2914_v23 = vmul.f32 -1.442695, %v990_v15 }
 0xaae   :  { %3385 = vtanh.f32 %v990_v15  ;;  %v356_v15 = vadd.f32 %v4061_v40, %v4063_v46 }
 0xaba   :  { %v3384_v17 = vpop.eup %3383 }
 0xabb   :  { %v997_v18 = vadd.f32 1.0, %v3384_v17  ;;  %v3386_v19 = vpop.eup %3385 }
 0xabd   :  { %3387 = vrcp.f32 %v997_v18 }
 0xabe   :  { %3389 = vpow2.f32 %v2914_v23 }
 0xaca   :  { %v3388_v20 = vpop.eup %3387 }
 0xacb   :  { %v1005_v22 = vmul.f32 %v3388_v20, %v3386_v19  ;;  %v3390_v24 = vpop.eup %3389  ;;  %v1004_v30 = vmul.f32 %v3388_v20, %v902_v48  ;;  %v1241_v48 = vld [vmem:[#allocation2 + $0x10] sm:$0xff] }
 0xacc   :  { %v998_v25 = vadd.f32 1.0, %v3390_v24 }
 0xacd   :  { %1007 = vrot.lane.b32.xlu0 %v1005_v22, %s3740_s3 }
 0xace   :  { %3391 = vrcp.f32 %v998_v25 }
 0xadb   :  { %v3392_v31 = vpop.eup %3391 }
 0xb3f   :  { %v1008_v52 = vpop.permute.xlu0 %1007 }
 0xb40   :  { %v1010_v54 = vadd.f32 %v1008_v52, %v1004_v30  ;;  %v1262_v52 = vld [vmem:[#allocation10 + $0x18] sm:$0xff] }
 0xb41   :  { %3073 = vmatprep.subr.mxu0 %v1262_v52 }
 0xb42   :  { %3393 = vtanh.f32 %v1010_v54 }
 0xb4f   :  { %v3394_v55 = vpop.eup %3393 }
 0xb50   :  { %v4205_v56 = vmul.f32 %v3394_v55, %v3392_v31 }
 0xb52   :  { %1014 = vrot.lane.b32.xlu1 %v4205_v56, %s3740_s3 }
 0xbc4   :  { %v1015_v59 = vpop.permute.xlu1 %1014 }
 0xbc5   :  { %1018 = vst.msk [vmem:[#allocation2 + $0x28] sm:$0xff] %vm477_vm1, %v1015_v59  ;;  %2915 = vmatmul.mubr.msk.f32.vlgmr.msra.gmra.mxu0 %vm374_vm2, %v1015_v59  ;;  %v4243_v59 = vld [vmem:[#allocation12 + $0x18] sm:$0xff] }
 0xbc6   :  { %3074 = vmatpush3.msra.mxu0 %v1262_v52 }
 0xbcc   :  { %v1244_v51 = vld [vmem:[#allocation2 + $0x28] sm:$0xff] }
 0xc85   :  { %v1092_v57 = vpop.f32.mrf.mxu0 }
 0xc86   :  { %v1097_v60 = vadd.f32 %v1092_v57, %v348_v6 }
 0xc87   :  { %v1094_v62 = vpop.f32.mrf.mxu0 }
 0xc88   :  { %v2916_v61 = vmul.f32 -1.442695, %v1097_v60  ;;  %v1098_v58 = vadd.f32 %v1094_v62, %v350_v63  ;;  %v4258_v62 = vld [vmem:[#allocation12 + $0x8] sm:$0xff]  ;;  %v4264_v63 = vld [vmem:[#allocation12] sm:$0xff] }
 0xc8a   :  { %3395 = vpow2.f32 %v2916_v61  ;;  %v2917_v34 = vmul.f32 -1.442695, %v1098_v58  ;;  %v4252_v61 = vld [vmem:[#allocation12 + $0x10] sm:$0xff] }
 0xc8b   :  { %3397 = vtanh.f32 %v1098_v58 }
 0xc97   :  { %v3396_v2 = vpop.eup %3395 }
 0xc98   :  { %v1105_v4 = vadd.f32 1.0, %v3396_v2  ;;  %v3398_v5 = vpop.eup %3397 }
 0xc9a   :  { %3399 = vrcp.f32 %v1105_v4 }
 0xc9b   :  { %3401 = vpow2.f32 %v2917_v34 }
 0xca7   :  { %v3400_v10 = vpop.eup %3399 }
 0xca8   :  { %v1113_v13 = vmul.f32 %v3400_v10, %v3398_v5  ;;  %v3402_v21 = vpop.eup %3401  ;;  %v1112_v29 = vmul.f32 %v3400_v10, %v1010_v54 }
 0xca9   :  { %v1106_v26 = vadd.f32 1.0, %v3402_v21 }
 0xcaa   :  { %1115 = vrot.lane.b32.xlu0 %v1113_v13, %s3740_s3 }
 0xcab   :  { %3403 = vrcp.f32 %v1106_v26 }
 0xcb8   :  { %v3404_v35 = vpop.eup %3403 }
 0xd1c   :  { %v1116_v32 = vpop.permute.xlu0 %1115 }
 0xd1d   :  { %v1118_v33 = vadd.f32 %v1116_v32, %v1112_v29 }
 0xd1f   :  { %3405 = vtanh.f32 %v1118_v33 }
 0xd2c   :  { %v3406_v38 = vpop.eup %3405 }
 0xd2d   :  { %v1120_v39 = vmul.f32 %v3406_v38, %v3404_v35 }
 0xd2f   :  { %1122 = vrot.lane.b32.xlu1 %v1120_v39, %s3740_s3 }
 0xda1   :  { %v1123_v41 = vpop.permute.xlu1 %1122 }
 0xda2   :  { %1126 = vst.msk [vmem:[#allocation2 + $0x30] sm:$0xff] %vm477_vm1, %v1123_v41  ;;  %2918 = vmatmul.mubr.msk.f32.vlgmr.msra.gmra.mxu1 %vm374_vm2, %v1123_v41 }
 0xda3   :  { %3094 = vmatpush3.msra.mxu1 %v1258_v16  ;;  %3101 = vmatprep.mubr.msk.f32.mxu1 %vm477_vm1, %v1239_v27 }
 0xda4   :  { %3095 = vmatprep.subr.mxu1 %v1257_v43 }
 0xda5   :  { %3096 = vmatpush3.msra.mxu1 %v1257_v43 }
 0xda6   :  { %3097 = vmatprep.subr.mxu1 %v1256_v44 }
 0xda7   :  { %3098 = vmatpush3.msra.mxu1 %v1256_v44 }
 0xda8   :  { %3099 = vmatprep.subr.mxu1 %v1255_v45 }
 0xda9   :  { %3100 = vmatpush3.msra.mxu1 %v1255_v45  ;;  %v1245_v7 = vld [vmem:[#allocation2 + $0x30] sm:$0xff]  ;;  %v4321_v45 = vld [vmem:[%s4576_s7] ss:$0 sm:$0xff] }
 0xdaa   :  { %3102 = vmatmul.mubr.msk.f32.vlgmr.msra.gmra.mxu1 %vm477_vm1, %v1240_v47  ;;  %3135 = vmatprep.subr.mxu1 %v3739_v0 }
 0xdab   :  { %3104 = vmatprep.mubr.msk.f32.mxu1 %vm477_vm1, %v1241_v48  ;;  %3136 = vmatpush3.msra.mxu1 %v4243_v59 }
 0xdac   :  { %3137 = vmatprep.subr.mxu1 %v3739_v0 }
 0xdad   :  { %3138 = vmatpush3.msra.mxu1 %v4252_v61 }
 0xdae   :  { %3105 = vmatmul.mubr.msk.f32.gmra.mxu1 %vm477_vm1, %v1242_v28  ;;  %3139 = vmatprep.subr.mxu1 %v3739_v0 }
 0xdaf   :  { %3107 = vmatprep.mubr.msk.f32.mxu1 %vm477_vm1, %v1243_v49  ;;  %3140 = vmatpush3.msra.mxu1 %v4258_v62 }
 0xdb0   :  { %3141 = vmatprep.subr.mxu1 %v3739_v0 }
 0xdb1   :  { %3142 = vmatpush3.msra.mxu1 %v4264_v63 }
 0xdb2   :  { %3108 = vmatmul.mubr.msk.f32.gmra.mxu1 %vm477_vm1, %v1244_v51  ;;  %3157 = vmatprep.subr.mxu1 %v3739_v0 }
 0xdb3   :  { %3110 = vmatprep.mubr.msk.f32.mxu1 %vm477_vm1, %v1245_v7 }
 0xe62   :  { %v1200_v9 = vpop.f32.mrf.mxu1 }
 0xe63   :  { %v1205_v11 = vadd.f32 %v1200_v9, %v354_v8 }
 0xe64   :  { %v1202_v14 = vpop.f32.mrf.mxu1 }
 0xe65   :  { %v2919_v12 = vmul.f32 -1.442695, %v1205_v11  ;;  %v1206_v17 = vadd.f32 %v1202_v14, %v356_v15 }
 0xe67   :  { %3407 = vpow2.f32 %v2919_v12  ;;  %v2920_v36 = vmul.f32 -1.442695, %v1206_v17 }
 0xe68   :  { %3409 = vtanh.f32 %v1206_v17 }
 0xe74   :  { %v3408_v18 = vpop.eup %3407 }
 0xe75   :  { %v1213_v19 = vadd.f32 1.0, %v3408_v18  ;;  %v3410_v20 = vpop.eup %3409 }
 0xe77   :  { %3411 = vrcp.f32 %v1213_v19 }
 0xe78   :  { %3413 = vpow2.f32 %v2920_v36 }
 0xe84   :  { %v3412_v22 = vpop.eup %3411 }
 0xe85   :  { %v1221_v23 = vmul.f32 %v3412_v22, %v3410_v20  ;;  %v3414_v37 = vpop.eup %3413  ;;  %v1220_v46 = vmul.f32 %v3412_v22, %v1118_v33  ;;  %v3103_v33 = vpop.f32.mrf.mxu1 }
 0xe86   :  { %v1214_v40 = vadd.f32 1.0, %v3414_v37 }
 0xe87   :  { %1223 = vrot.lane.b32.xlu0 %v1221_v23, %s3740_s3 }
 0xe88   :  { %3415 = vrcp.f32 %v1214_v40 }
 0xe8b   :  { %1127 = vrot.lane.b32.xlu0 %v1120_v39, %s3741_s23  ;;  %v1482_v39 = vpop.f32.mrf.mxu1 }
 0xe8f   :  { %911 = vrot.lane.b32.xlu0 %v4178_v50, %s3741_s23  ;;  %v1261_v50 = vld [vmem:[#allocation10 + $0x10] sm:$0xff] }
 0xe90   :  { %3075 = vmatprep.subr.mxu0 %v1261_v50 }
 0xe91   :  { %3076 = vmatpush3.msra.mxu0 %v1261_v50 }
 0xe93   :  { %695 = vrot.lane.b32.xlu0 %v4125_v42, %s3741_s23  ;;  %v1259_v42 = vld [vmem:[#allocation10] sm:$0xff] }
 0xe95   :  { %v3416_v55 = vpop.eup %3415 }
 0xe97   :  { %479 = vrot.lane.b32.xlu0 %v4069_v1, %s3741_s23  ;;  %v1260_v1 = vld [vmem:[#allocation10 + $0x8] sm:$0xff] }
 0xe98   :  { %3077 = vmatprep.subr.mxu0 %v1260_v1 }
 0xe99   :  { %3078 = vmatpush3.msra.mxu0 %v1260_v1 }
 0xe9a   :  { %3079 = vmatprep.subr.mxu0 %v1259_v42 }
 0xe9b   :  { %3080 = vmatpush3.msra.mxu0 %v1259_v42 }
 0xe9c   :  { %3113 = vmatprep.subr.mxu0 %v3739_v0 }
 0xef9   :  { %v1224_v24 = vpop.permute.xlu0 %1223 }
 0xefa   :  { %v1226_v25 = vadd.f32 %v1224_v24, %v1220_v46 }
 0xefc   :  { %3417 = vtanh.f32 %v1226_v25 }
 0xefd   :  { %v1128_v30 = vpop.permute.xlu0 %1127 }
 0xefe   :  { %1131 = vst.msk [vmem:[#allocation3 + $0x8] sm:$0xff] %vm477_vm1, %v1128_v30 }
 0xf01   :  { %v912_v54 = vpop.permute.xlu0 %911 }
 0xf02   :  { %915 = vst.msk [vmem:[#allocation3 + $0x18] sm:$0xff] %vm477_vm1, %v912_v54 }
 0xf05   :  { %v696_v31 = vpop.permute.xlu0 %695 }
 0xf06   :  { %699 = vst.msk [vmem:[#allocation3 + $0x28] sm:$0xff] %vm477_vm1, %v696_v31 }
 0xf09   :  { %v3418_v6 = vpop.eup %3417  ;;  %v480_v57 = vpop.permute.xlu0 %479 }
 0xf0a   :  { %483 = vst.msk [vmem:[#allocation3 + $0x38] sm:$0xff] %vm477_vm1, %v480_v57  ;;  %v4247_v60 = vmul.f32 %v3418_v6, %v3416_v55 }
 0xf0c   :  { %1235 = vrot.lane.b32.xlu1 %v4247_v60, %s3741_s23 }
 0xf0d   :  { %v1252_v16 = vld [vmem:[#allocation3 + $0x28] sm:$0xff] }
 0xf10   :  { %1019 = vrot.lane.b32.xlu1 %v4205_v56, %s3741_s23 }
 0xf11   :  { %v4289_v21 = vld [vmem:[#allocation3 + $0x38] sm:$0xff] }
 0xf14   :  { %803 = vrot.lane.b32.xlu1 %v4151_v3, %s3741_s23  ;;  %v1248_v3 = vld [vmem:[#allocation3 + $0x8] sm:$0xff] }
 0xf18   :  { %587 = vrot.lane.b32.xlu1 %v4099_v53, %s3741_s23  ;;  %v1250_v53 = vld [vmem:[#allocation3 + $0x18] sm:$0xff] }
 0xf7e   :  { %v1236_v58 = vpop.permute.xlu1 %1235 }
 0xf7f   :  { %1238 = vst.msk [vmem:[#allocation3] sm:$0xff] %vm477_vm1, %v1236_v58 }
 0xf82   :  { %v1020_v56 = vpop.permute.xlu1 %1019 }
 0xf83   :  { %1023 = vst.msk [vmem:[#allocation3 + $0x10] sm:$0xff] %vm477_vm1, %v1020_v56 }
 0xf86   :  { %v804_v2 = vpop.permute.xlu1 %803  ;;  %v1247_v4 = vld [vmem:[#allocation3] sm:$0xff] }
 0xf87   :  { %807 = vst.msk [vmem:[#allocation3 + $0x20] sm:$0xff] %vm477_vm1, %v804_v2  ;;  %3081 = vmatprep.mubr.msk.f32.mxu0 %vm477_vm1, %v1247_v4 }
 0xf88   :  { %3082 = vmatmul.mubr.msk.f32.vlgmr.msra.gmra.mxu0 %vm477_vm1, %v1248_v3  ;;  %v3106_v3 = vpop.f32.mrf.mxu1 }
 0xf89   :  { %3114 = vmatpush3.msra.mxu0 %v4243_v59 }
 0xf8a   :  { %v588_v5 = vpop.permute.xlu1 %587  ;;  %v1249_v10 = vld [vmem:[#allocation3 + $0x10] sm:$0xff]  ;;  %3115 = vmatprep.subr.mxu0 %v3739_v0 }
 0xf8b   :  { %591 = vst.msk [vmem:[#allocation3 + $0x30] sm:$0xff] %vm477_vm1, %v588_v5  ;;  %3084 = vmatprep.mubr.msk.f32.mxu0 %vm477_vm1, %v1249_v10  ;;  %3116 = vmatpush3.msra.mxu0 %v4252_v61  ;;  %v1492_v5 = vpop.f32.mrf.mxu1 }
 0xf8c   :  { %3085 = vmatmul.mubr.msk.f32.gmra.mxu0 %vm477_vm1, %v1250_v53  ;;  %3117 = vmatprep.subr.mxu0 %v3739_v0 }
 0xf8d   :  { %3118 = vmatpush3.msra.mxu0 %v4258_v62  ;;  %v4364_v10 = vpop.f32.mrf.mxu1 }
 0xf8e   :  { %v1251_v13 = vld [vmem:[#allocation3 + $0x20] sm:$0xff]  ;;  %3119 = vmatprep.subr.mxu0 %v3739_v0 }
 0xf8f   :  { %3087 = vmatprep.mubr.msk.f32.mxu0 %vm477_vm1, %v1251_v13  ;;  %3120 = vmatpush3.msra.mxu0 %v4264_v63  ;;  %v4366_v53 = vpop.f32.mrf.mxu1 }
 0xf90   :  { %3088 = vmatmul.mubr.msk.f32.gmra.mxu0 %vm477_vm1, %v1252_v16  ;;  %3124 = vmatprep.subr.mxu0 %v3739_v0 }
 0xf92   :  { %v1253_v34 = vld [vmem:[#allocation3 + $0x30] sm:$0xff] }
 0xf93   :  { %3090 = vmatprep.mubr.msk.f32.mxu0 %vm477_vm1, %v1253_v34 }
 0xf94   :  { %3091 = vmatmul.mubr.msk.f32.gmra.mxu0 %vm477_vm1, %v4289_v21 }
 0xf95   :  { %3121 = vmatprep.mubr.msk.f32.mxu0 %vm3742_vm3, %v3739_v0 }
 0xf98   :  { %3122 = vmatmul.mubr.f32.vlgmr.msra.gmra.mxu0 %v3739_v0 }
 0xf99   :  { %3125 = vmatpush3.msra.mxu0 %v4243_v59  ;;  %3132 = vmatprep.mubr.msk.f32.mxu0 %vm3742_vm3, %v3739_v0 }
 0xf9a   :  { %3126 = vmatprep.subr.mxu0 %v3739_v0 }
 0xf9b   :  { %3127 = vmatpush3.msra.mxu0 %v4252_v61 }
 0xf9c   :  { %3128 = vmatprep.subr.mxu0 %v3739_v0 }
 0xf9d   :  { %3129 = vmatpush3.msra.mxu0 %v4258_v62 }
 0xf9e   :  { %3130 = vmatprep.subr.mxu0 %v3739_v0 }
 0xf9f   :  { %3131 = vmatpush3.msra.mxu0 %v4264_v63 }
 0xfa0   :  { %3146 = vmatprep.subr.mxu0 %v3739_v0 }
0x1048   :  { %v3083_v26 = vpop.f32.mrf.mxu0 }
0x1049   :  { %v1488_v36 = vadd.f32 %v3103_v33, %v3083_v26 }
0x104a   :  { %v1353_v29 = vpop.f32.mrf.mxu0 }
0x104b   :  { %v1483_v43 = vadd.f32 %v1482_v39, %v1353_v29  ;;  %v1529_v37 = vadd.f32 %v4321_v45, %v1488_v36 }
0x104c   :  { %v4306_v32 = vpop.f32.mrf.mxu0 }
0x104d   :  { %v1528_v47 = vadd.f32 %v4321_v45, %v1483_v43 }
0x104e   :  { %v4308_v35 = vpop.f32.mrf.mxu0 }
0x104f   :  { %v1493_v16 = vadd.f32 %v1492_v5, %v4308_v35 }
0x1050   :  { %v4310_v38 = vpop.f32.mrf.mxu0 }
0x1051   :  { %v1530_v26 = vadd.f32 %v4321_v45, %v1493_v16 }
0x1052   :  { %v4312_v41 = vpop.f32.mrf.mxu0 }
0x1054   :  { %v4314_v27 = vpop.f32.mrf.mxu0 }
0x1056   :  { %v4316_v44 = vpop.f32.mrf.mxu0 }
0x1058   :  { %v1608_v48 = vpop.f32.mrf.mxu0 }
0x1059   :  { %v1612_v28 = vadd.f32 %v1608_v48, %v1528_v47 }
0x105a   :  { %v3123_v49 = vpop.f32.mrf.mxu0 }
0x105b   :  { %3419 = vtanh.f32 %v1612_v28  ;;  %v2938_v7 = vmul.f32 -1.442695, %v1612_v28 }
0x105d   :  { %3421 = vpow2.f32 %v2938_v7 }
0x1068   :  { %v3420_v51 = vpop.eup %3419 }
0x1069   :  { %1622 = vrot.lane.b32.xlu1 %v3420_v51, %s3740_s3 }
0x106a   :  { %v3422_v8 = vpop.eup %3421 }
0x106b   :  { %v1616_v9 = vadd.f32 1.0, %v3422_v8 }
0x106d   :  { %3423 = vrcp.f32 %v1616_v9 }
0x107a   :  { %v3424_v11 = vpop.eup %3423 }
0x107b   :  { %v1620_v15 = vmul.f32 0.0, %v3424_v11 }
0x10db   :  { %v1623_v12 = vpop.permute.xlu1 %1622 }
0x10dc   :  { %v1625_v14 = vmul.f32 %v3424_v11, %v1623_v12 }
0x10de   :  { %1627 = vrot.lane.b32.xlu0 %v1625_v14, %s3741_s23 }
0x1150   :  { %v1628_v17 = vpop.permute.xlu0 %1627 }
0x1151   :  { %v1630_v18 = vadd.f32 %v1628_v17, %v1620_v15  ;;  %v1498_v17 = vadd.f32 %v3106_v3, %v4306_v32 }
0x1153   :  { %3425 = vtanh.f32 %v1630_v18 }
0x1160   :  { %v3426_v19 = vpop.eup %3425 }
0x1161   :  { %1633 = vrot.lane.b32.xlu1 %v3426_v19, %s3740_s3 }
0x11d3   :  { %v1634_v20 = vpop.permute.xlu1 %1633 }
0x11d4   :  { %v1636_v22 = vmul.f32 %v3424_v11, %v1634_v20 }
0x11d6   :  { %1638 = vrot.lane.b32.xlu0 %v1636_v22, %s3741_s23 }
0x1248   :  { %v1639_v23 = vpop.permute.xlu0 %1638 }
0x1249   :  { %3133 = vmatmul.mubr.msk.f32.vlgmr.msra.gmra.mxu0 %vm477_vm1, %v1639_v23 }
0x124a   :  { %3147 = vmatpush3.msra.mxu0 %v4243_v59  ;;  %3154 = vmatprep.mubr.msk.f32.mxu0 %vm3742_vm3, %v3739_v0 }
0x124b   :  { %3148 = vmatprep.subr.mxu0 %v3739_v0 }
0x124c   :  { %3149 = vmatpush3.msra.mxu0 %v4252_v61 }
0x124d   :  { %3150 = vmatprep.subr.mxu0 %v3739_v0 }
0x124e   :  { %3151 = vmatpush3.msra.mxu0 %v4258_v62 }
0x124f   :  { %3152 = vmatprep.subr.mxu0 %v3739_v0 }
0x1250   :  { %3153 = vmatpush3.msra.mxu0 %v4264_v63 }
0x1251   :  { %3168 = vmatprep.subr.mxu0 %v3739_v0 }
0x1309   :  { %v1708_v40 = vpop.f32.mrf.mxu0 }
0x130a   :  { %v1712_v46 = vadd.f32 %v1708_v40, %v1529_v37 }
0x130b   :  { %v3134_v24 = vpop.f32.mrf.mxu0 }
0x130c   :  { %3427 = vtanh.f32 %v1712_v46  ;;  %v2940_v30 = vmul.f32 -1.442695, %v1712_v46 }
0x130e   :  { %3429 = vpow2.f32 %v2940_v30 }
0x1319   :  { %v3428_v25 = vpop.eup %3427 }
0x131a   :  { %1722 = vrot.lane.b32.xlu1 %v3428_v25, %s3740_s3 }
0x131b   :  { %v3430_v52 = vpop.eup %3429 }
0x131c   :  { %v1716_v50 = vadd.f32 1.0, %v3430_v52 }
0x131e   :  { %3431 = vrcp.f32 %v1716_v50 }
0x132b   :  { %v3432_v54 = vpop.eup %3431 }
0x132c   :  { %v1720_v31 = vmul.f32 %v3432_v54, %v1630_v18  ;;  %v1531_v18 = vadd.f32 %v4321_v45, %v1498_v17  ;;  %v2346_v17 = vld [vmem:[#allocation15 + $0x18] sm:$0xff] }
0x138c   :  { %v1723_v1 = vpop.permute.xlu1 %1722 }
0x138d   :  { %v1725_v42 = vmul.f32 %v3432_v54, %v1723_v1 }
0x138f   :  { %1727 = vrot.lane.b32.xlu0 %v1725_v42, %s3741_s23 }
0x1393   :  { %1230 = vrot.lane.b32.xlu0 %v4247_v60, %s3740_s3 }
0x1401   :  { %v1728_v55 = vpop.permute.xlu0 %1727 }
0x1402   :  { %v1730_v6 = vadd.f32 %v1728_v55, %v1720_v31  ;;  %v1503_v31 = vadd.f32 %v4366_v53, %v4312_v41 }
0x1404   :  { %3433 = vtanh.f32 %v1730_v6  ;;  %v1532_v55 = vadd.f32 %v4321_v45, %v1503_v31 }
0x1405   :  { %v1231_v57 = vpop.permute.xlu0 %1230 }
0x1406   :  { %1234 = vst.msk [vmem:[#allocation2 + $0x38] sm:$0xff] %vm477_vm1, %v1231_v57 }
0x140d   :  { %v4345_v58 = vld [vmem:[#allocation2 + $0x38] sm:$0xff] }
0x140e   :  { %3111 = vmatmul.mubr.msk.f32.gmra.mxu1 %vm477_vm1, %v4345_v58 }
0x140f   :  { %3143 = vmatprep.mubr.msk.f32.mxu1 %vm3742_vm3, %v3739_v0 }
0x1411   :  { %v3434_v56 = vpop.eup %3433 }
0x1412   :  { %1733 = vrot.lane.b32.xlu1 %v3434_v56, %s3740_s3 }
0x1484   :  { %v1734_v2 = vpop.permute.xlu1 %1733 }
0x1485   :  { %v1736_v60 = vmul.f32 %v3432_v54, %v1734_v2 }
0x1487   :  { %1738 = vrot.lane.b32.xlu1 %v1736_v60, %s3741_s23 }
0x14ce   :  { %v4368_v13 = vpop.f32.mrf.mxu1 }
0x14d0   :  { %v4371_v34 = vpop.f32.mrf.mxu1 }
0x14f9   :  { %v1739_v4 = vpop.permute.xlu1 %1738 }
0x14fa   :  { %3144 = vmatmul.mubr.msk.f32.vlgmr.msra.gmra.mxu1 %vm477_vm1, %v1739_v4 }
0x14fb   :  { %3158 = vmatpush3.msra.mxu1 %v4243_v59  ;;  %3165 = vmatprep.mubr.msk.f32.mxu1 %vm3742_vm3, %v3739_v0 }
0x14fc   :  { %3159 = vmatprep.subr.mxu1 %v3739_v0 }
0x14fd   :  { %3160 = vmatpush3.msra.mxu1 %v4252_v61 }
0x14fe   :  { %3161 = vmatprep.subr.mxu1 %v3739_v0 }
0x14ff   :  { %3162 = vmatpush3.msra.mxu1 %v4258_v62 }
0x1500   :  { %3163 = vmatprep.subr.mxu1 %v3739_v0 }
0x1501   :  { %3164 = vmatpush3.msra.mxu1 %v4264_v63 }
0x1502   :  { %3179 = vmatprep.subr.mxu1 %v3739_v0 }
0x15ba   :  { %v1808_v29 = vpop.f32.mrf.mxu1 }
0x15bb   :  { %v1812_v33 = vadd.f32 %v1808_v29, %v1530_v26 }
0x15bc   :  { %v3145_v39 = vpop.f32.mrf.mxu1 }
0x15bd   :  { %3435 = vtanh.f32 %v1812_v33  ;;  %v2942_v47 = vmul.f32 -1.442695, %v1812_v33 }
0x15bf   :  { %3437 = vpow2.f32 %v2942_v47 }
0x15ca   :  { %v3436_v43 = vpop.eup %3435 }
0x15cb   :  { %1822 = vrot.lane.b32.xlu0 %v3436_v43, %s3740_s3 }
0x15cc   :  { %v3438_v48 = vpop.eup %3437 }
0x15cd   :  { %v1816_v28 = vadd.f32 1.0, %v3438_v48 }
0x15cf   :  { %3439 = vrcp.f32 %v1816_v28 }
0x15dc   :  { %v3440_v49 = vpop.eup %3439 }
0x15dd   :  { %v1820_v35 = vmul.f32 %v3440_v49, %v1730_v6 }
0x163d   :  { %v1823_v51 = vpop.permute.xlu0 %1822 }
0x163e   :  { %v1825_v7 = vmul.f32 %v3440_v49, %v1823_v51 }
0x1640   :  { %1827 = vrot.lane.b32.xlu1 %v1825_v7, %s3741_s23 }
0x16b2   :  { %v1828_v8 = vpop.permute.xlu1 %1827 }
0x16b3   :  { %v1830_v9 = vadd.f32 %v1828_v8, %v1820_v35 }
0x16b5   :  { %3441 = vtanh.f32 %v1830_v9 }
0x16c2   :  { %v3442_v11 = vpop.eup %3441 }
0x16c3   :  { %1833 = vrot.lane.b32.xlu0 %v3442_v11, %s3740_s3 }
0x1735   :  { %v1834_v12 = vpop.permute.xlu0 %1833 }
0x1736   :  { %v1836_v14 = vmul.f32 %v3440_v49, %v1834_v12 }
0x1738   :  { %1838 = vrot.lane.b32.xlu1 %v1836_v14, %s3741_s23 }
0x17aa   :  { %v1839_v15 = vpop.permute.xlu1 %1838 }
0x17ab   :  { %3155 = vmatmul.mubr.msk.f32.vlgmr.msra.gmra.mxu0 %vm477_vm1, %v1839_v15 }
0x17ac   :  { %3169 = vmatpush3.msra.mxu0 %v4243_v59  ;;  %3176 = vmatprep.mubr.msk.f32.mxu0 %vm3742_vm3, %v3739_v0 }
0x17ad   :  { %3170 = vmatprep.subr.mxu0 %v3739_v0 }
0x17ae   :  { %3171 = vmatpush3.msra.mxu0 %v4252_v61 }
0x17af   :  { %3172 = vmatprep.subr.mxu0 %v3739_v0 }
0x17b0   :  { %3173 = vmatpush3.msra.mxu0 %v4258_v62 }
0x17b1   :  { %3174 = vmatprep.subr.mxu0 %v3739_v0 }
0x17b2   :  { %3175 = vmatpush3.msra.mxu0 %v4264_v63 }
0x17b3   :  { %3190 = vmatprep.subr.mxu0 %v3739_v0 }
0x186b   :  { %v1908_v19 = vpop.f32.mrf.mxu0 }
0x186c   :  { %v1912_v20 = vadd.f32 %v1908_v19, %v1531_v18  ;;  %v2345_v19 = vld [vmem:[#allocation15 + $0x10] sm:$0xff] }
0x186d   :  { %v3156_v22 = vpop.f32.mrf.mxu0 }
0x186e   :  { %3443 = vtanh.f32 %v1912_v20  ;;  %v2944_v36 = vmul.f32 -1.442695, %v1912_v20  ;;  %v2344_v20 = vld [vmem:[#allocation15 + $0x8] sm:$0xff]  ;;  %v2343_v22 = vld [vmem:[#allocation15] sm:$0xff] }
0x1870   :  { %3445 = vpow2.f32 %v2944_v36 }
0x187b   :  { %v3444_v23 = vpop.eup %3443 }
0x187c   :  { %1922 = vrot.lane.b32.xlu0 %v3444_v23, %s3740_s3  ;;  %v1513_v23 = vadd.f32 %v4371_v34, %v4316_v44 }
0x187d   :  { %v3446_v37 = vpop.eup %3445 }
0x187e   :  { %v1916_v40 = vadd.f32 1.0, %v3446_v37  ;;  %v1534_v36 = vadd.f32 %v4321_v45, %v1513_v23 }
0x1880   :  { %3447 = vrcp.f32 %v1916_v40 }
0x188d   :  { %v3448_v46 = vpop.eup %3447 }
0x188e   :  { %v1920_v32 = vmul.f32 %v3448_v46, %v1830_v9 }
0x18ee   :  { %v1923_v24 = vpop.permute.xlu0 %1922 }
0x18ef   :  { %v1925_v25 = vmul.f32 %v3448_v46, %v1923_v24 }
0x18f1   :  { %1927 = vrot.lane.b32.xlu1 %v1925_v25, %s3741_s23 }
0x1963   :  { %v1928_v30 = vpop.permute.xlu1 %1927 }
0x1964   :  { %v1930_v52 = vadd.f32 %v1928_v30, %v1920_v32 }
0x1966   :  { %3449 = vtanh.f32 %v1930_v52 }
0x1973   :  { %v3450_v50 = vpop.eup %3449 }
0x1974   :  { %1933 = vrot.lane.b32.xlu0 %v3450_v50, %s3740_s3 }
0x19e6   :  { %v1934_v54 = vpop.permute.xlu0 %1933 }
0x19e7   :  { %v1936_v1 = vmul.f32 %v3448_v46, %v1934_v54 }
0x19e9   :  { %1938 = vrot.lane.b32.xlu1 %v1936_v1, %s3741_s23 }
0x1a5b   :  { %v1939_v42 = vpop.permute.xlu1 %1938 }
0x1a5c   :  { %3166 = vmatmul.mubr.msk.f32.vlgmr.msra.gmra.mxu1 %vm477_vm1, %v1939_v42 }
0x1a5d   :  { %3180 = vmatpush3.msra.mxu1 %v4243_v59  ;;  %3187 = vmatprep.mubr.msk.f32.mxu1 %vm3742_vm3, %v3739_v0 }
0x1a5e   :  { %3181 = vmatprep.subr.mxu1 %v3739_v0 }
0x1a5f   :  { %3182 = vmatpush3.msra.mxu1 %v4252_v61 }
0x1a60   :  { %3183 = vmatprep.subr.mxu1 %v3739_v0 }
0x1a61   :  { %3184 = vmatpush3.msra.mxu1 %v4258_v62 }
0x1a62   :  { %3185 = vmatprep.subr.mxu1 %v3739_v0 }
0x1a63   :  { %3186 = vmatpush3.msra.mxu1 %v4264_v63 }
0x1a64   :  { %3201 = vmatprep.subr.mxu1 %v3739_v0 }
0x1b1c   :  { %v2008_v6 = vpop.f32.mrf.mxu1 }
0x1b1d   :  { %v2012_v57 = vadd.f32 %v2008_v6, %v1532_v55 }
0x1b1e   :  { %v3167_v56 = vpop.f32.mrf.mxu1 }
0x1b1f   :  { %3451 = vtanh.f32 %v2012_v57  ;;  %v2946_v60 = vmul.f32 -1.442695, %v2012_v57  ;;  %v2341_v57 = vld [vmem:[#allocation13 + $0x18] sm:$0xff] }
0x1b21   :  { %3453 = vpow2.f32 %v2946_v60  ;;  %v2339_v60 = vld [vmem:[#allocation13 + $0x8] sm:$0xff] }
0x1b2c   :  { %v3452_v2 = vpop.eup %3451 }
0x1b2d   :  { %2022 = vrot.lane.b32.xlu0 %v3452_v2, %s3740_s3  ;;  %v2340_v2 = vld [vmem:[#allocation13 + $0x10] sm:$0xff] }
0x1b2e   :  { %v3454_v4 = vpop.eup %3453 }
0x1b2f   :  { %v2016_v3 = vadd.f32 1.0, %v3454_v4  ;;  %v2338_v4 = vld [vmem:[#allocation13] sm:$0xff] }
0x1b31   :  { %3455 = vrcp.f32 %v2016_v3  ;;  %v1518_v3 = vadd.f32 %v4368_v13, %v4314_v27 }
0x1b3e   :  { %v3456_v5 = vpop.eup %3455 }
0x1b3f   :  { %v2020_v41 = vmul.f32 %v3456_v5, %v1930_v52 }
0x1b9f   :  { %v2023_v16 = vpop.permute.xlu0 %2022 }
0x1ba0   :  { %v2025_v26 = vmul.f32 %v3456_v5, %v2023_v16 }
0x1ba2   :  { %2027 = vrot.lane.b32.xlu1 %v2025_v26, %s3741_s23 }
0x1c14   :  { %v2028_v53 = vpop.permute.xlu1 %2027 }
0x1c15   :  { %v2030_v29 = vadd.f32 %v2028_v53, %v2020_v41 }
0x1c17   :  { %3457 = vtanh.f32 %v2030_v29 }
0x1c24   :  { %v3458_v33 = vpop.eup %3457 }
0x1c25   :  { %2033 = vrot.lane.b32.xlu0 %v3458_v33, %s3740_s3 }
0x1c97   :  { %v2034_v39 = vpop.permute.xlu0 %2033 }
0x1c98   :  { %v2036_v43 = vmul.f32 %v3456_v5, %v2034_v39  ;;  %v1535_v5 = vadd.f32 %v4321_v45, %v1518_v3  ;;  %v2780_v3 = vld [vmem:[%s4585_s16 + $0x28] sm:$0xff] }
0x1c9a   :  { %2038 = vrot.lane.b32.xlu1 %v2036_v43, %s3741_s23 }
0x1d0c   :  { %v2039_v47 = vpop.permute.xlu1 %2038 }
0x1d0d   :  { %3177 = vmatmul.mubr.msk.f32.vlgmr.msra.gmra.mxu0 %vm477_vm1, %v2039_v47 }
0x1d0e   :  { %3191 = vmatpush3.msra.mxu0 %v4243_v59  ;;  %3198 = vmatprep.mubr.msk.f32.mxu0 %vm3742_vm3, %v3739_v0  ;;  %v1508_v59 = vadd.f32 %v4364_v10, %v4310_v38 }
0x1d0f   :  { %3192 = vmatprep.subr.mxu0 %v3739_v0 }
0x1d10   :  { %3193 = vmatpush3.msra.mxu0 %v4252_v61  ;;  %v1533_v48 = vadd.f32 %v4321_v45, %v1508_v59 }
0x1d11   :  { %3194 = vmatprep.subr.mxu0 %v3739_v0 }
0x1d12   :  { %3195 = vmatpush3.msra.mxu0 %v4258_v62 }
0x1d13   :  { %3196 = vmatprep.subr.mxu0 %v3739_v0 }
0x1d14   :  { %3197 = vmatpush3.msra.mxu0 %v4264_v63 }
0x1d15   :  { %3212 = vmatprep.subr.mxu0 %v3739_v0 }
0x1dcd   :  { %v2108_v28 = vpop.f32.mrf.mxu0 }
0x1dce   :  { %v2112_v49 = vadd.f32 %v2108_v28, %v1533_v48 }
0x1dcf   :  { %v3178_v51 = vpop.f32.mrf.mxu0 }
0x1dd0   :  { %3459 = vtanh.f32 %v2112_v49  ;;  %v2948_v7 = vmul.f32 -1.442695, %v2112_v49 }
0x1dd2   :  { %3461 = vpow2.f32 %v2948_v7 }
0x1ddd   :  { %v3460_v61 = vpop.eup %3459 }
0x1dde   :  { %2122 = vrot.lane.b32.xlu0 %v3460_v61, %s3740_s3 }
0x1ddf   :  { %v3462_v62 = vpop.eup %3461 }
0x1de0   :  { %v2116_v35 = vadd.f32 1.0, %v3462_v62 }
0x1de2   :  { %3463 = vrcp.f32 %v2116_v35 }
0x1def   :  { %v3464_v63 = vpop.eup %3463 }
0x1df0   :  { %v2120_v38 = vmul.f32 %v3464_v63, %v2030_v29  ;;  %v2955_v29 = vld [vmem:[%s4579_s10] ss:$0 sm:$0xff]  ;;  %s3743_s10 = smov 96  }
0x1e50   :  { %v2123_v8 = vpop.permute.xlu0 %2122 }
0x1e51   :  { %v2125_v9 = vmul.f32 %v3464_v63, %v2123_v8 }
0x1e53   :  { %2127 = vrot.lane.b32.xlu1 %v2125_v9, %s3741_s23 }
0x1ec5   :  { %v2128_v10 = vpop.permute.xlu1 %2127 }
0x1ec6   :  { %v2130_v11 = vadd.f32 %v2128_v10, %v2120_v38  ;;  %v2526_v10 = vld [vmem:[#allocation18 + $0x18] sm:$0xff] }
0x1ec8   :  { %3465 = vtanh.f32 %v2130_v11 }
0x1ed5   :  { %v3466_v12 = vpop.eup %3465 }
0x1ed6   :  { %2133 = vrot.lane.b32.xlu0 %v3466_v12, %s3740_s3  ;;  %v2524_v12 = vld [vmem:[#allocation18 + $0x8] sm:$0xff] }
0x1f48   :  { %v2134_v14 = vpop.permute.xlu0 %2133 }
0x1f49   :  { %v2136_v15 = vmul.f32 %v3464_v63, %v2134_v14  ;;  %v2523_v14 = vld [vmem:[#allocation18] sm:$0xff] }
0x1f4b   :  { %2138 = vrot.lane.b32.xlu1 %v2136_v15, %s3741_s23  ;;  %v2522_v15 = vld [vmem:[#allocation16 + $0x18] sm:$0xff] }
0x1fbd   :  { %v2139_v18 = vpop.permute.xlu1 %2138 }
0x1fbe   :  { %3188 = vmatmul.mubr.msk.f32.vlgmr.msra.gmra.mxu1 %vm477_vm1, %v2139_v18 }
0x1fbf   :  { %3202 = vmatpush3.msra.mxu1 %v2346_v17  ;;  %3209 = vmatprep.mubr.msk.f32.mxu1 %vm3742_vm3, %v3739_v0  ;;  %v2521_v17 = vld [vmem:[#allocation16 + $0x10] sm:$0xff] }
0x1fc0   :  { %3203 = vmatprep.subr.mxu1 %v3739_v0 }
0x1fc1   :  { %3204 = vmatpush3.msra.mxu1 %v2345_v19  ;;  %v2520_v19 = vld [vmem:[#allocation16 + $0x8] sm:$0xff] }
0x1fc2   :  { %3205 = vmatprep.subr.mxu1 %v3739_v0 }
0x1fc3   :  { %3206 = vmatpush3.msra.mxu1 %v2344_v20  ;;  %v2519_v20 = vld [vmem:[#allocation16] sm:$0xff] }
0x1fc4   :  { %3207 = vmatprep.subr.mxu1 %v3739_v0 }
0x1fc5   :  { %3208 = vmatpush3.msra.mxu1 %v2343_v22 }
0x1fc6   :  { %3210 = vmatmul.mubr.msk.f32.vlgmr.msra.gmra.mxu1 %vm477_vm1, %v4289_v21  ;;  %3223 = vmatprep.subr.mxu1 %v3739_v0 }
0x1fc7   :  { %3231 = vmatprep.mubr.msk.f32.mxu1 %vm3742_vm3, %v3739_v0  ;;  %3224 = vmatpush3.msra.mxu1 %v2526_v10 }
0x1fc8   :  { %3225 = vmatprep.subr.mxu1 %v3739_v0 }
0x207e   :  { %v2208_v37 = vpop.f32.mrf.mxu1 }
0x207f   :  { %v2212_v40 = vadd.f32 %v2208_v37, %v1534_v36 }
0x2080   :  { %v3189_v46 = vpop.f32.mrf.mxu1 }
0x2081   :  { %3467 = vtanh.f32 %v2212_v40  ;;  %v2950_v21 = vmul.f32 -1.442695, %v2212_v40  ;;  %v2693_v46 = vld [vmem:[#allocation19 + $0x38] sm:$0xff] }
0x2083   :  { %3469 = vpow2.f32 %v2950_v21 }
0x2086   :  { %v2416_v24 = vpop.f32.mrf.mxu1 }
0x2088   :  { %v3211_v25 = vpop.f32.mrf.mxu1 }
0x2089   :  { %v2691_v25 = vld [vmem:[#allocation19 + $0x28] sm:$0xff] }
0x208e   :  { %v3468_v32 = vpop.eup %3467 }
0x208f   :  { %2222 = vrot.lane.b32.xlu0 %v3468_v32, %s3740_s3  ;;  %v2690_v32 = vld [vmem:[#allocation19 + $0x20] sm:$0xff] }
0x2090   :  { %v3470_v30 = vpop.eup %3469 }
0x2091   :  { %v2216_v52 = vadd.f32 1.0, %v3470_v30  ;;  %v2689_v30 = vld [vmem:[#allocation19 + $0x18] sm:$0xff] }
0x2093   :  { %3471 = vrcp.f32 %v2216_v52  ;;  %v2688_v52 = vld [vmem:[#allocation19 + $0x10] sm:$0xff] }
0x20a0   :  { %v3472_v50 = vpop.eup %3471 }
0x20a1   :  { %v2220_v44 = vmul.f32 %v3472_v50, %v2130_v11  ;;  %v2525_v11 = vld [vmem:[#allocation18 + $0x10] sm:$0xff] }
0x20a2   :  { %3226 = vmatpush3.msra.mxu1 %v2525_v11 }
0x20a3   :  { %3227 = vmatprep.subr.mxu1 %v3739_v0 }
0x20a4   :  { %3228 = vmatpush3.msra.mxu1 %v2524_v12 }
0x20a5   :  { %3229 = vmatprep.subr.mxu1 %v3739_v0 }
0x20a6   :  { %3230 = vmatpush3.msra.mxu1 %v2523_v14 }
0x20a7   :  { %3245 = vmatprep.subr.mxu1 %v3739_v0 }
0x2101   :  { %v2223_v54 = vpop.permute.xlu0 %2222 }
0x2102   :  { %v2225_v1 = vmul.f32 %v3472_v50, %v2223_v54  ;;  %v2686_v54 = vld [vmem:[#allocation19] sm:$0xff] }
0x2104   :  { %2227 = vrot.lane.b32.xlu1 %v2225_v1, %s3741_s23  ;;  %v2790_v1 = vld [vmem:[%s4585_s16 + $0x78] sm:$0xff] }
0x2176   :  { %v2228_v34 = vpop.permute.xlu1 %2227 }
0x2177   :  { %v2230_v42 = vadd.f32 %v2228_v34, %v2220_v44  ;;  %v2789_v44 = vld [vmem:[%s4585_s16 + $0x70] sm:$0xff]  ;;  %v2788_v34 = vld [vmem:[%s4585_s16 + $0x68] sm:$0xff] }
0x2179   :  { %3473 = vtanh.f32 %v2230_v42 }
0x2186   :  { %v3474_v31 = vpop.eup %3473 }
0x2187   :  { %2233 = vrot.lane.b32.xlu0 %v3474_v31, %s3740_s3  ;;  %v2786_v31 = vld [vmem:[%s4585_s16 + $0x58] sm:$0xff] }
0x21f9   :  { %v2234_v55 = vpop.permute.xlu0 %2233 }
0x21fa   :  { %v2236_v6 = vmul.f32 %v3472_v50, %v2234_v55  ;;  %v2687_v50 = vld [vmem:[#allocation19 + $0x8] sm:$0xff]  ;;  %v2785_v55 = vld [vmem:[%s4585_s16 + $0x50] sm:$0xff] }
0x21fc   :  { %2238 = vrot.lane.b32.xlu1 %v2236_v6, %s3741_s23  ;;  %v2784_v6 = vld [vmem:[%s4585_s16 + $0x48] sm:$0xff] }
0x226e   :  { %v2239_v56 = vpop.permute.xlu1 %2238 }
0x226f   :  { %3199 = vmatmul.mubr.msk.f32.vlgmr.msra.gmra.mxu0 %vm477_vm1, %v2239_v56 }
0x2270   :  { %3213 = vmatpush3.msra.mxu0 %v2341_v57  ;;  %3220 = vmatprep.mubr.msk.f32.mxu0 %vm3742_vm3, %v3739_v0  ;;  %v2783_v57 = vld [vmem:[%s4585_s16 + $0x40] sm:$0xff] }
0x2271   :  { %3214 = vmatprep.subr.mxu0 %v3739_v0 }
0x2272   :  { %3215 = vmatpush3.msra.mxu0 %v2340_v2  ;;  %v2782_v2 = vld [vmem:[%s4585_s16 + $0x38] sm:$0xff] }
0x2273   :  { %3216 = vmatprep.subr.mxu0 %v3739_v0 }
0x2274   :  { %3217 = vmatpush3.msra.mxu0 %v2339_v60 }
0x2275   :  { %3218 = vmatprep.subr.mxu0 %v3739_v0 }
0x2276   :  { %3219 = vmatpush3.msra.mxu0 %v2338_v4  ;;  %v2781_v4 = vld [vmem:[%s4585_s16 + $0x30] sm:$0xff] }
0x2277   :  { %3221 = vmatmul.mubr.msk.f32.vlgmr.msra.gmra.mxu0 %vm477_vm1, %v4345_v58  ;;  %3234 = vmatprep.subr.mxu0 %v3739_v0 }
0x2278   :  { %3242 = vmatprep.mubr.msk.f32.mxu0 %vm3742_vm3, %v3739_v0  ;;  %3235 = vmatpush3.msra.mxu0 %v2522_v15 }
0x2279   :  { %3236 = vmatprep.subr.mxu0 %v3739_v0 }
0x227a   :  { %3237 = vmatpush3.msra.mxu0 %v2521_v17 }
0x227b   :  { %3238 = vmatprep.subr.mxu0 %v3739_v0 }
0x227c   :  { %3239 = vmatpush3.msra.mxu0 %v2520_v19 }
0x227d   :  { %3240 = vmatprep.subr.mxu0 %v3739_v0 }
0x227e   :  { %3241 = vmatpush3.msra.mxu0 %v2519_v20 }
0x227f   :  { %3264 = vmatprep.subr.mxu0 %v3739_v0 }
0x232f   :  { %v2308_v16 = vpop.f32.mrf.mxu0 }
0x2330   :  { %v2312_v26 = vadd.f32 %v2308_v16, %v1535_v5  ;;  %v2779_v5 = vld [vmem:[%s4585_s16 + $0x20] sm:$0xff]  ;;  %v2778_v16 = vld [vmem:[%s4585_s16 + $0x18] sm:$0xff] }
0x2331   :  { %v3200_v41 = vpop.f32.mrf.mxu0 }
0x2332   :  { %3475 = vtanh.f32 %v2312_v26  ;;  %v2952_v27 = vmul.f32 -1.442695, %v2312_v26  ;;  %v2959_v41 = vld [vmem:[%s4582_s13] ss:$0 sm:$0xff] }
0x2337   :  { %v2489_v53 = vpop.f32.mrf.mxu0 }
0x2338   :  { %v2490_v58 = vadd.f32 %v2489_v53, %v2416_v24  ;;  %v2692_v24 = vld [vmem:[#allocation19 + $0x30] sm:$0xff] }
0x2339   :  { %v3222_v33 = vpop.f32.mrf.mxu0 }
0x233a   :  { %v2500_v39 = vadd.f32 %v2955_v29, %v2490_v58 }
0x233c   :  { %3477 = vtanh.f32 %v2500_v39  ;;  %v2956_v45 = vmul.f32 -1.442695, %v2500_v39  ;;  %v2777_v39 = vld [vmem:[%s4585_s16 + $0x10] sm:$0xff] }
0x233d   :  { %3479 = vpow2.f32 %v2952_v27  ;;  %v2960_v27 = vld [vmem:[%s4584_s15] ss:$0 sm:$0xff] }
0x233e   :  { %3481 = vpow2.f32 %v2956_v45 }
0x233f   :  { %v3476_v43 = vpop.eup %3475 }
0x2340   :  { %2322 = vrot.lane.b32.xlu0 %v3476_v43, %s3740_s3  ;;  %v2776_v43 = vld [vmem:[%s4585_s16 + $0x8] sm:$0xff] }
0x2349   :  { %v3478_v47 = vpop.eup %3477 }
0x234a   :  { %2509 = vrot.lane.b32.xlu0 %v3478_v47, %s3740_s3  ;;  %v3480_v13 = vpop.eup %3479  ;;  %v2775_v47 = vld [vmem:[%s4585_s16] sm:$0xff] }
0x234b   :  { %v2316_v59 = vadd.f32 1.0, %v3480_v13  ;;  %v3482_v48 = vpop.eup %3481 }
0x234c   :  { %v2504_v28 = vadd.f32 1.0, %v3482_v48 }
0x234d   :  { %3483 = vrcp.f32 %v2316_v59 }
0x234e   :  { %3485 = vrcp.f32 %v2504_v28  ;;  %v2962_v28 = vld [vmem:[%s4586_s17] ss:$0 sm:$0xff] }
0x235a   :  { %v3484_v49 = vpop.eup %3483 }
0x235b   :  { %v3486_v7 = vpop.eup %3485  ;;  %v2320_v8 = vmul.f32 %v3484_v49, %v2230_v42  ;;  %v2787_v42 = vld [vmem:[%s4585_s16 + $0x60] sm:$0xff]  ;;  %s3691_s16 = scalar_lea.vmem %s2877_s5, 32 }
0x235c   :  { %p3692_p8 = scmp.ne.s32.totalorder %s2877_s5, %s3691_s16  ;;  %p3697_p10 = scmp.lt.s32.totalorder %s3691_s16, %s3691_s16 }
0x235e   :  { %p3698_p11 = por %p3697_p10, %p3696_p9 }
0x2360   :  { %p3699_p12 = pnand %p3698_p11, %p3692_p8 }
0x23b2   :  { %v2323_v51 = vpop.permute.xlu0 %2322 }
0x23b3   :  { %v2325_v61 = vmul.f32 %v3484_v49, %v2323_v51 }
0x23b5   :  { %2327 = vrot.lane.b32.xlu1 %v2325_v61, %s3741_s23 }
0x23bc   :  { %v2510_v62 = vpop.permute.xlu0 %2509 }
0x23bd   :  { %v2512_v35 = vmul.f32 %v3486_v7, %v2510_v62 }
0x23bf   :  { %3487 = vtanh.f32 %v2512_v35 }
0x23cc   :  { %v3488_v63 = vpop.eup %3487 }
0x23cd   :  { %2515 = vrot.lane.b32.xlu0 %v3488_v63, %s3743_s10 }
0x2427   :  { %v2328_v9 = vpop.permute.xlu1 %2327 }
0x2428   :  { %v2330_v38 = vadd.f32 %v2328_v9, %v2320_v8 }
0x242a   :  { %3489 = vtanh.f32 %v2330_v38 }
0x2437   :  { %v3490_v18 = vpop.eup %3489 }
0x2438   :  { %2333 = vrot.lane.b32.xlu1 %v3490_v18, %s3740_s3 }
0x243f   :  { %v2516_v22 = vpop.permute.xlu0 %2515 }
0x2440   :  { %v2518_v23 = vmul.f32 %v3486_v7, %v2516_v22 }
0x2442   :  { %2528 = vrot.lane.b32.xlu1 %v2518_v23, %s3741_s23 }
0x24aa   :  { %v2334_v36 = vpop.permute.xlu1 %2333 }
0x24ab   :  { %v2336_v37 = vmul.f32 %v3484_v49, %v2334_v36 }
0x24ad   :  { %2603 = vrot.lane.b32.xlu0 %v2336_v37, %s3741_s23 }
0x24b4   :  { %v2529_v40 = vpop.permute.xlu1 %2528 }
0x24b5   :  { %3232 = vmatmul.mubr.msk.f32.vlgmr.msra.gmra.mxu1 %vm477_vm1, %v2529_v40 }
0x24b6   :  { %3261 = vmatprep.mubr.msk.f32.mxu1 %vm3742_vm3, %v3739_v0  ;;  %3246 = vmatpush3.msra.mxu1 %v2693_v46 }
0x24b7   :  { %3247 = vmatprep.subr.mxu1 %v3739_v0 }
0x24b8   :  { %3248 = vmatpush3.msra.mxu1 %v2692_v24 }
0x24b9   :  { %3249 = vmatprep.subr.mxu1 %v3739_v0 }
0x24ba   :  { %3250 = vmatpush3.msra.mxu1 %v2691_v25 }
0x24bb   :  { %3251 = vmatprep.subr.mxu1 %v3739_v0 }
0x24bc   :  { %3252 = vmatpush3.msra.mxu1 %v2690_v32 }
0x24bd   :  { %3253 = vmatprep.subr.mxu1 %v3739_v0 }
0x24be   :  { %3254 = vmatpush3.msra.mxu1 %v2689_v30 }
0x24bf   :  { %3255 = vmatprep.subr.mxu1 %v3739_v0 }
0x24c0   :  { %3256 = vmatpush3.msra.mxu1 %v2688_v52 }
0x24c1   :  { %3257 = vmatprep.subr.mxu1 %v3739_v0 }
0x24c2   :  { %3258 = vmatpush3.msra.mxu1 %v2687_v50 }
0x24c3   :  { %3259 = vmatprep.subr.mxu1 %v3739_v0 }
0x24c4   :  { %3260 = vmatpush3.msra.mxu1 %v2686_v54 }
0x251f   :  { %v2604_v21 = vpop.permute.xlu0 %2603 }
0x2520   :  { %3243 = vmatmul.mubr.msk.f32.vlgmr.msra.gmra.mxu0 %vm477_vm1, %v2604_v21 }
0x2521   :  { %3296 = vmatprep.mubr.msk.f32.mxu0 %vm3742_vm3, %v3739_v0  ;;  %3265 = vmatpush3.msra.mxu0 %v2790_v1 }
0x2522   :  { %3266 = vmatprep.subr.mxu0 %v3739_v0 }
0x2523   :  { %3267 = vmatpush3.msra.mxu0 %v2789_v44 }
0x2524   :  { %3268 = vmatprep.subr.mxu0 %v3739_v0 }
0x2525   :  { %3269 = vmatpush3.msra.mxu0 %v2788_v34 }
0x2526   :  { %3270 = vmatprep.subr.mxu0 %v3739_v0 }
0x2527   :  { %3271 = vmatpush3.msra.mxu0 %v2787_v42 }
0x2528   :  { %3272 = vmatprep.subr.mxu0 %v3739_v0 }
0x2529   :  { %3273 = vmatpush3.msra.mxu0 %v2786_v31 }
0x252a   :  { %3274 = vmatprep.subr.mxu0 %v3739_v0 }
0x252b   :  { %3275 = vmatpush3.msra.mxu0 %v2785_v55 }
0x252c   :  { %3276 = vmatprep.subr.mxu0 %v3739_v0 }
0x252d   :  { %3277 = vmatpush3.msra.mxu0 %v2784_v6 }
0x252e   :  { %3278 = vmatprep.subr.mxu0 %v3739_v0 }
0x252f   :  { %3279 = vmatpush3.msra.mxu0 %v2783_v57 }
0x2530   :  { %3280 = vmatprep.subr.mxu0 %v3739_v0 }
0x2531   :  { %3281 = vmatpush3.msra.mxu0 %v2782_v2 }
0x2532   :  { %3282 = vmatprep.subr.mxu0 %v3739_v0 }
0x2533   :  { %3283 = vmatpush3.msra.mxu0 %v2781_v4 }
0x2534   :  { %3284 = vmatprep.subr.mxu0 %v3739_v0 }
0x2535   :  { %3285 = vmatpush3.msra.mxu0 %v2780_v3 }
0x2536   :  { %3286 = vmatprep.subr.mxu0 %v3739_v0 }
0x2537   :  { %3287 = vmatpush3.msra.mxu0 %v2779_v5 }
0x2538   :  { %3288 = vmatprep.subr.mxu0 %v3739_v0 }
0x2539   :  { %3289 = vmatpush3.msra.mxu0 %v2778_v16 }
0x253a   :  { %3290 = vmatprep.subr.mxu0 %v3739_v0 }
0x253b   :  { %3291 = vmatpush3.msra.mxu0 %v2777_v39 }
0x253c   :  { %3292 = vmatprep.subr.mxu0 %v3739_v0 }
0x253d   :  { %3293 = vmatpush3.msra.mxu0 %v2776_v43 }
0x253e   :  { %3294 = vmatprep.subr.mxu0 %v3739_v0 }
0x253f   :  { %3295 = vmatpush3.msra.mxu0 %v2775_v47 }
0x2575   :  { %v2598_v56 = vpop.f32.mrf.mxu1 }
0x2577   :  { %v3233_v60 = vpop.f32.mrf.mxu1 }
0x25e0   :  { %v2673_v26 = vpop.f32.mrf.mxu0 }
0x25e1   :  { %v2674_v53 = vadd.f32 %v2673_v26, %v2598_v56 }
0x25e2   :  { %v3244_v29 = vpop.f32.mrf.mxu0 }
0x25e3   :  { %v2684_v58 = vadd.f32 %v2959_v41, %v2674_v53 }
0x25e5   :  { %v2685_v33 = vmax.f32 %v2684_v58, 0.0 }
0x25e7   :  { %3262 = vmatmul.mubr.msk.f32.vlgmr.msra.gmra.mxu1 %vm374_vm2, %v2685_v33 }
0x26a7   :  { %v2770_v45 = vpop.f32.mrf.mxu1 }
0x26a8   :  { %v2771_v13 = vadd.f32 %v2960_v27, %v2770_v45 }
0x26a9   :  { %v3263_v59 = vpop.f32.mrf.mxu1 }
0x26aa   :  { %v2774_v48 = vmax.f32 %v2771_v13, 0.0 }
0x26ac   :  { %3297 = vmatmul.mubr.f32.vlgmr.msra.gmra.mxu0 %v2774_v48 }
0x276c   :  { %v2864_v49 = vpop.f32.mrf.mxu0 }
0x276d   :  { %v2865_v51 = vadd.f32 %v2962_v28, %v2864_v49 }
0x276e   :  { %v3298_v0 = vpop.f32.mrf.mxu0 }
0x276f   :  { %2869 = vst.msk [vmem:[#allocation21] sm:$0x3] %vm2868_vm4, %v2865_v51 }
0x2770   :  { %3702 = shalt.err (!%p3699_p12)
}
0x2771   :  { %2879 = dma.vmem_to_hbm [thread:$0]  %s2877_s5, 32, %s4587_s18, [#allocation6]  }
0x2772   :  { %3723 = dma.done.wait [#allocation6], 32  }
0x2773   :  { %3724 = vsyncadd [#allocation6], 4294967264 }
0x2774   :  { %2883 = vsyncpa [#allocation5], 1 }
0x2775   :  { %2884 = vsyncpa [#allocation8], 1 }
0x2776   :  { %2885 = vsyncpa [#allocation11], 1 }
0x2777   :  { %2886 = vsyncpa [#allocation14], 1 }
0x2778   :  { %2887 = vsyncpa [#allocation17], 1 }
0x2779   :  { %2888 = vsyncpa [#allocation20], 1 }
0x277a   :  { %2889 = vsyncpa [#allocation6], 1 }

</bundles_post_ra>
